<compile_context>
chip_gen: v7x
topology: tpu7x:2x2x1
jax: 0.10.0
libtpu: 0.0.40
codegen_flags: <defaults>
</compile_context>

<pallas_src>
import numpy as np

import jax
import jax.numpy as jnp
from jax import lax
from jax.experimental import pallas as pl
from jax.experimental.pallas import tpu as pltpu

NEG_SLOPE = 0.01   # torch.nn.functional.leaky_relu default
BN_EPS = 1e-5      # torch.nn.BatchNorm1d default


# ----------------------------- fused forward kernel --------------------------

def encoder_kernel(x_ref, w0_ref, b0_ref,
                   w1_ref, b1_ref, g1_ref, be1_ref,
                   w2_ref, b2_ref, g2_ref, be2_ref,
                   tapm_ref, vm_ref, pool_ref, perm_ref, fcw_ref, fcb_ref,
                   o_ref):
    cin_p = x_ref.shape[0]            # input channels padded to a sublane multiple
    bl = x_ref.shape[1]               # constant lane width = batch * input_dim
    hidden = w0_ref.shape[0]
    kk = w0_ref.shape[1] // cin_p     # conv kernel size K
    pad = (kk - 1) // 2
    n_blocks = w1_ref.shape[0]

    def shifted(x, k, lvl):
        # result[:, j] == x[:, j + d] (d = k - pad) inside a batch segment,
        # 0 where the tap would cross a batch boundary / leave the valid region.
        d = k - pad
        if d == 0:
            return x
        mask = tapm_ref[lvl * kk + k: lvl * kk + k + 1, :]           # (1, bl)
        return pltpu.roll(x, shift=(-d) % bl, axis=1) * mask

    def conv(x, wcat, bias, lvl):
        # im2col: K rolled copies stacked on sublanes -> ONE MXU matmul.
        cols = [shifted(x, k, lvl) for k in range(kk)]
        stack = jnp.concatenate(cols, axis=0) if kk > 1 else cols[0]  # (K*C, bl)
        return jnp.dot(wcat, stack, preferred_element_type=jnp.float32) + bias

    def batchnorm(y, gamma, beta, lvl):
        # Training-mode BatchNorm1d (fresh-module default): batch statistics over
        # (batch, length) = the valid lanes; biased variance as E[y^2] - E[y]^2.
        # TODO(synk): running-stat (momentum) buffer updates are a training-only
        # side effect and are not modelled here.
        n_valid = float(bl >> lvl)
        vmask = vm_ref[lvl:lvl + 1, :]                               # (1, bl)
        ym = y * vmask
        mean = jnp.sum(ym, axis=1, keepdims=True) * (1.0 / n_valid)
        msq = jnp.sum(ym * ym, axis=1, keepdims=True) * (1.0 / n_valid)
        var = jnp.maximum(msq - mean * mean, 0.0)
        return (y - mean) * lax.rsqrt(var + BN_EPS) * gamma + beta

    def leaky_relu(y):
        return jnp.where(y > 0, y, NEG_SLOPE * y)

    def maxpool2(y, lvl):
        # max(y[:, 2q], y[:, 2q+1]) via one roll (XLU) + one precomputed
        # even-lane selection matmul.  Invalid output lanes come out as 0.
        nxt = pltpu.roll(y, shift=bl - 1, axis=1)        # nxt[:, j] = y[:, j+1]
        z = jnp.maximum(y, nxt)
        return jnp.dot(z, pool_ref[lvl], preferred_element_type=jnp.float32)

    # Conv1d(in_channels -> hidden), 'same' padding.
    h = conv(x_ref[...], w0_ref[...], b0_ref[...], 0)

    # DownBlock x n_blocks:
    #   conv1 -> bn1 -> lrelu -> conv2 -> bn2 -> (+x) -> lrelu -> maxpool2
    for i in range(n_blocks):
        res = h
        y = leaky_relu(batchnorm(conv(h, w1_ref[i], b1_ref[i], i),
                                 g1_ref[i], be1_ref[i], i))
        y = batchnorm(conv(y, w2_ref[i], b2_ref[i], i), g2_ref[i], be2_ref[i], i)
        y = leaky_relu(y + res)
        h = maxpool2(y, i)

    # Flatten(start_dim=1, channel-major like torch) + Linear, as (n_out, batch).
    lf = fcw_ref.shape[1] // hidden                      # final per-batch length
    nb = perm_ref.shape[1] // lf                         # batch
    h_perm = jnp.dot(h, perm_ref[...], preferred_element_type=jnp.float32)  # (H, lf*B)
    pieces = [h_perm[:, l * nb:(l + 1) * nb] for l in range(lf)]
    hstack = jnp.concatenate(pieces, axis=0) if lf > 1 else pieces[0]       # (lf*H, B)
    o_ref[...] = jnp.dot(fcw_ref[...], hstack,
                         preferred_element_type=jnp.float32) + fcb_ref[...]


# ------------------------------ host-side helpers -----------------------------

def init_params(key, input_dim, latent_dim, in_channels, hidden, kernel_size):
    """Deterministic parameters in PyTorch layouts
    (Conv1d weight: (Cout, Cin, K); Linear weight: (out, in))."""
    keys = iter(jax.random.split(key, 64))

    def conv_p(cin, cout):
        w = jax.random.normal(next(keys), (cout, cin, kernel_size), jnp.float32) * 0.2
        b = jax.random.normal(next(keys), (cout,), jnp.float32) * 0.1
        return w, b

    params = {"conv0": conv_p(in_channels, hidden), "down": []}
    for _ in range(5):
        w1, b1 = conv_p(hidden, hidden)
        w2, b2 = conv_p(hidden, hidden)
        params["down"].append(dict(
            w1=w1, b1=b1, g1=jnp.ones((hidden,), jnp.float32),
            be1=jnp.zeros((hidden,), jnp.float32),
            w2=w2, b2=b2, g2=jnp.ones((hidden,), jnp.float32),
            be2=jnp.zeros((hidden,), jnp.float32)))
    feat = hidden * input_dim // 32
    params["fc_w"] = jax.random.normal(next(keys), (latent_dim * 2, feat), jnp.float32) * 0.2
    params["fc_b"] = jax.random.normal(next(keys), (latent_dim * 2,), jnp.float32) * 0.1
    return params


def prepare_params(params, batch, input_dim):
    """One-time layout conversion + selection/mask precompute (outside the hot
    path).  Depends on (batch, input_dim) because batch-boundary masks, pool
    selectors and the flatten permutation are baked in."""
    w0, b0 = params["conv0"]
    hidden, in_ch, kk = w0.shape
    down = params["down"]
    n_blocks = len(down)
    pad = (kk - 1) // 2
    cin_p = ((in_ch + 7) // 8) * 8          # pad channels to a sublane multiple
    bl0 = batch * input_dim                 # constant lane width inside the kernel

    def conv_cat(w, cin_pad):
        # (Cout, Cin, K) -> (Cout, K*cin_pad), column index = k*cin_pad + c.
        cout, cin, k = w.shape
        wp = jnp.pad(w, ((0, 0), (0, cin_pad - cin), (0, 0)))
        return jnp.transpose(wp, (0, 2, 1)).reshape(cout, k * cin_pad)

    def col(name):
        return jnp.stack([p[name] for p in down]).reshape(n_blocks, hidden, 1)

    # Per-level tap masks (batch-boundary zeroing for each rolled copy),
    # valid-lane masks (for BN statistics) and max-pool even-lane selectors.
    tapm = np.zeros((n_blocks * kk, bl0), np.float32)
    vmask = np.zeros((n_blocks, bl0), np.float32)
    pool = np.zeros((n_blocks, bl0, bl0), np.float32)
    # TODO(synk): for large B*L the (bl0, bl0) pool selectors are the VMEM
    # scaling hazard (v7x: 64 MiB); shrink them per level / use strided reads
    # and add a "parallel" batch grid axis for v7x's second TensorCore (minding
    # that training-mode BN statistics span the whole batch).
    j = np.arange(bl0)
    for lvl in range(n_blocks):
        n_valid = bl0 >> lvl
        seg = n_valid // batch
        vmask[lvl, :n_valid] = 1.0
        for k in range(kk):
            d = k - pad
            if d == 0:
                tapm[lvl * kk + k] = 1.0            # unused (unshifted tap)
            else:
                ok = (j < n_valid) & ((j // seg) == ((j + d) // seg))
                tapm[lvl * kk + k] = ok.astype(np.float32)
        q = np.arange(n_valid // 2)
        pool[lvl, 2 * q, q] = 1.0

    n_out, feat = params["fc_w"].shape
    lf = feat // hidden                     # final per-batch length (input_dim // 32)
    # Flatten permutation: P[b*lf + l, l*batch + b] = 1  (only valid rows set).
    perm = np.zeros((bl0, lf * batch), np.float32)
    for b in range(batch):
        for l in range(lf):
            perm[b * lf + l, l * batch + b] = 1.0
    # torch Flatten order is channel-major: W[o, c*lf + l] -> Wcat[o, l*hidden + c].
    fcw = jnp.transpose(params["fc_w"].reshape(n_out, hidden, lf),
                        (0, 2, 1)).reshape(n_out, lf * hidden)

    return {
        "w0": conv_cat(w0, cin_p),                                   # (H, K*Cin_p)
        "b0": b0.reshape(hidden, 1),
        "w1": jnp.stack([conv_cat(p["w1"], hidden) for p in down]),  # (nb, H, K*H)
        "w2": jnp.stack([conv_cat(p["w2"], hidden) for p in down]),
        "b1": col("b1"), "g1": col("g1"), "be1": col("be1"),
        "b2": col("b2"), "g2": col("g2"), "be2": col("be2"),
        "tapm": jnp.asarray(tapm), "vm": jnp.asarray(vmask),
        "pool": jnp.asarray(pool), "perm": jnp.asarray(perm),
        "fcw": fcw, "fcb": params["fc_b"].reshape(n_out, 1),
    }


@jax.jit
def conv_encoder_forward(x, prep):
    """x: (B, Cin, L) float32 -> (B, 2*latent_dim), matching ConvEncoder.forward."""
    batch, cin, length = x.shape
    bl0 = batch * length
    assert length % 32 == 0, "five MaxPool1d(2) stages require L % 32 == 0"
    assert bl0 % 128 == 0, "batch*L must be a multiple of 128 (lane-aligned rolls)"
    assert prep["tapm"].shape[1] == bl0, "prep was built for a different batch/length"
    hidden = prep["w0"].shape[0]
    assert hidden % 8 == 0, "hidden_channels must be a sublane multiple"
    cin_p = ((cin + 7) // 8) * 8
    n_out = prep["fcb"].shape[0]

    # Lane-dense batch-folded layout (Cin_p, B*L) -- layout plumbing, not compute.
    x_cbl = jnp.transpose(x, (1, 0, 2)).reshape(cin, bl0)
    if cin_p != cin:
        x_cbl = jnp.pad(x_cbl, ((0, cin_p - cin), (0, 0)))

    vmem = pl.BlockSpec(memory_space=pltpu.MemorySpace.VMEM)
    out_ob = pl.pallas_call(
        encoder_kernel,
        out_shape=jax.ShapeDtypeStruct((n_out, batch), jnp.float32),
        in_specs=[vmem] * 17,
        out_specs=vmem,
        # Single invocation, no grid: all weights, masks, selectors and
        # activations (<400 KB total at these sizes) stay VMEM-resident.
    )(x_cbl, prep["w0"], prep["b0"],
      prep["w1"], prep["b1"], prep["g1"], prep["be1"],
      prep["w2"], prep["b2"], prep["g2"], prep["be2"],
      prep["tapm"], prep["vm"], prep["pool"], prep["perm"],
      prep["fcw"], prep["fcb"])
    return out_ob.T                          # (B, 2*latent_dim)


# ---------------------------- pure-JAX reference ------------------------------

def reference_forward(x, params):
    """Straightforward jnp re-implementation of the PyTorch module (for checking)."""
    def conv(z, w, b):                      # z (B,C,L), w (Cout,Cin,K)
        k = w.shape[2]
        pad = (k - 1) // 2
        zp = jnp.pad(z, ((0, 0), (0, 0), (pad, pad)))
        out = jnp.zeros((z.shape[0], w.shape[0], z.shape[2]), jnp.float32)
        for t in range(k):
            out = out + jnp.einsum("oi,bil->bol", w[:, :, t],
                                   zp[:, :, t:t + z.shape[2]],
                                   precision="highest")
        return out + b[None, :, None]

    def bn(y, g, be):
        m = jnp.mean(y, axis=(0, 2), keepdims=True)
        v = jnp.mean(jnp.square(y - m), axis=(0, 2), keepdims=True)
        return (y - m) * lax.rsqrt(v + BN_EPS) * g[None, :, None] + be[None, :, None]

    def lrelu(y):
        return jnp.where(y > 0, y, NEG_SLOPE * y)

    def pool(y):
        bsz, c, l = y.shape
        return jnp.max(y.reshape(bsz, c, l // 2, 2), axis=-1)

    h = conv(x, *params["conv0"])
    for p in params["down"]:
        y = lrelu(bn(conv(h, p["w1"], p["b1"]), p["g1"], p["be1"]))
        y = bn(conv(y, p["w2"], p["b2"]), p["g2"], p["be2"]) + h
        h = pool(lrelu(y))
    flat = h.reshape(h.shape[0], -1)
    return jnp.dot(flat, params["fc_w"].T, precision="highest") + params["fc_b"]


# ------------------------------------ main ------------------------------------

if __name__ == "__main__":
    input_dim, latent_dim = 64, 4
    in_channels, hidden, kernel_size = 2, 8, 3
    batch = 2

    key = jax.random.PRNGKey(0)
    kx, kp = jax.random.split(key)
    x = jax.random.normal(kx, (batch, in_channels, input_dim), jnp.float32)
    params = init_params(kp, input_dim, latent_dim, in_channels, hidden, kernel_size)
    prep = prepare_params(params, batch, input_dim)

    out = jax.block_until_ready(conv_encoder_forward(x, prep))
    assert out.shape == (batch, latent_dim * 2), out.shape
    assert bool(jnp.all(jnp.isfinite(out)))

    ref = reference_forward(x, params)
    assert bool(jnp.allclose(out, ref, rtol=2e-2, atol=2e-2)), (
        float(jnp.max(jnp.abs(out - ref))))
    print("KERNEL_OK")
</pallas_src>

<mosaic_0001>
module attributes {stable_mosaic.version = 11 : i64} {
  func.func @encoder_kernel(%arg0: memref<8x128xf32, #tpu.memory_space<vmem>>, %arg1: memref<8x24xf32, #tpu.memory_space<vmem>>, %arg2: memref<8x1xf32, #tpu.memory_space<vmem>>, %arg3: memref<5x8x24xf32, #tpu.memory_space<vmem>>, %arg4: memref<5x8x1xf32, #tpu.memory_space<vmem>>, %arg5: memref<5x8x1xf32, #tpu.memory_space<vmem>>, %arg6: memref<5x8x1xf32, #tpu.memory_space<vmem>>, %arg7: memref<5x8x24xf32, #tpu.memory_space<vmem>>, %arg8: memref<5x8x1xf32, #tpu.memory_space<vmem>>, %arg9: memref<5x8x1xf32, #tpu.memory_space<vmem>>, %arg10: memref<5x8x1xf32, #tpu.memory_space<vmem>>, %arg11: memref<15x128xf32, #tpu.memory_space<vmem>>, %arg12: memref<5x128xf32, #tpu.memory_space<vmem>>, %arg13: memref<5x128x128xf32, #tpu.memory_space<vmem>>, %arg14: memref<128x4xf32, #tpu.memory_space<vmem>>, %arg15: memref<8x16xf32, #tpu.memory_space<vmem>>, %arg16: memref<8x1xf32, #tpu.memory_space<vmem>>, %arg17: memref<8x2xf32, #tpu.memory_space<vmem>>) attributes {dimension_semantics = [], scalar_prefetch = 0 : i64, scratch_operands = 0 : i64, tpu.core_type = #tpu.core_type<tc>} {
    %c0 = arith.constant 0 : index
    %c0_0 = arith.constant 0 : index
    %0 = vector.load %arg0[%c0, %c0_0] : memref<8x128xf32, #tpu.memory_space<vmem>>, vector<8x128xf32>
    %c0_1 = arith.constant 0 : index
    %c0_2 = arith.constant 0 : index
    %1 = vector.load %arg1[%c0_1, %c0_2] : memref<8x24xf32, #tpu.memory_space<vmem>>, vector<8x24xf32>
    %c0_3 = arith.constant 0 : index
    %c0_4 = arith.constant 0 : index
    %2 = vector.load %arg2[%c0_3, %c0_4] : memref<8x1xf32, #tpu.memory_space<vmem>>, vector<8x1xf32>
    %c0_5 = arith.constant 0 : index
    %c0_6 = arith.constant 0 : index
    %3 = vector.load %arg11[%c0_5, %c0_6] : memref<15x128xf32, #tpu.memory_space<vmem>>, vector<1x128xf32>
    %c1_i32 = arith.constant 1 : i32
    %4 = tpu.dynamic_rotate %0 by %c1_i32 dim 1 : vector<8x128xf32>, i32 -> vector<8x128xf32>
    %5 = vector.broadcast %3 : vector<1x128xf32> to vector<8x128xf32>
    %6 = arith.mulf %4, %5 : vector<8x128xf32>
    %c2 = arith.constant 2 : index
    %c0_7 = arith.constant 0 : index
    %7 = vector.load %arg11[%c2, %c0_7] : memref<15x128xf32, #tpu.memory_space<vmem>>, vector<1x128xf32>
    %c127_i32 = arith.constant 127 : i32
    %8 = tpu.dynamic_rotate %0 by %c127_i32 dim 1 : vector<8x128xf32>, i32 -> vector<8x128xf32>
    %9 = vector.broadcast %7 : vector<1x128xf32> to vector<8x128xf32>
    %10 = arith.mulf %8, %9 : vector<8x128xf32>
    %11 = tpu.concatenate %6, %0, %10 in 0 : vector<8x128xf32>, vector<8x128xf32>, vector<8x128xf32> -> vector<24x128xf32>
    %cst = arith.constant dense<0.000000e+00> : vector<8x128xf32>
    %12 = tpu.matmul %1, %11, %cst {dimension_numbers = #tpu.dot_dimension_numbers<[1], [0], [0], [1], [0, 0, 1, 1], [], []>} : vector<8x24xf32>, vector<24x128xf32>, vector<8x128xf32> -> vector<8x128xf32>
    %13 = vector.broadcast %2 : vector<8x1xf32> to vector<8x128xf32>
    %14 = arith.addf %12, %13 : vector<8x128xf32>
    %c0_8 = arith.constant 0 : index
    %c0_9 = arith.constant 0 : index
    %c0_10 = arith.constant 0 : index
    %15 = vector.load %arg3[%c0_8, %c0_9, %c0_10] : memref<5x8x24xf32, #tpu.memory_space<vmem>>, vector<1x8x24xf32>
    %16 = vector.shape_cast %15 : vector<1x8x24xf32> to vector<8x24xf32>
    %c0_11 = arith.constant 0 : index
    %c0_12 = arith.constant 0 : index
    %c0_13 = arith.constant 0 : index
    %17 = vector.load %arg4[%c0_11, %c0_12, %c0_13] : memref<5x8x1xf32, #tpu.memory_space<vmem>>, vector<1x8x1xf32>
    %18 = vector.shape_cast %17 : vector<1x8x1xf32> to vector<8x1xf32>
    %c0_14 = arith.constant 0 : index
    %c0_15 = arith.constant 0 : index
    %19 = vector.load %arg11[%c0_14, %c0_15] : memref<15x128xf32, #tpu.memory_space<vmem>>, vector<1x128xf32>
    %c1_i32_16 = arith.constant 1 : i32
    %20 = tpu.dynamic_rotate %14 by %c1_i32_16 dim 1 : vector<8x128xf32>, i32 -> vector<8x128xf32>
    %21 = vector.broadcast %19 : vector<1x128xf32> to vector<8x128xf32>
    %22 = arith.mulf %20, %21 : vector<8x128xf32>
    %c2_17 = arith.constant 2 : index
    %c0_18 = arith.constant 0 : index
    %23 = vector.load %arg11[%c2_17, %c0_18] : memref<15x128xf32, #tpu.memory_space<vmem>>, vector<1x128xf32>
    %c127_i32_19 = arith.constant 127 : i32
    %24 = tpu.dynamic_rotate %14 by %c127_i32_19 dim 1 : vector<8x128xf32>, i32 -> vector<8x128xf32>
    %25 = vector.broadcast %23 : vector<1x128xf32> to vector<8x128xf32>
    %26 = arith.mulf %24, %25 : vector<8x128xf32>
    %27 = tpu.concatenate %22, %14, %26 in 0 : vector<8x128xf32>, vector<8x128xf32>, vector<8x128xf32> -> vector<24x128xf32>
    %cst_20 = arith.constant dense<0.000000e+00> : vector<8x128xf32>
    %28 = tpu.matmul %16, %27, %cst_20 {dimension_numbers = #tpu.dot_dimension_numbers<[1], [0], [0], [1], [0, 0, 1, 1], [], []>} : vector<8x24xf32>, vector<24x128xf32>, vector<8x128xf32> -> vector<8x128xf32>
    %29 = vector.broadcast %18 : vector<8x1xf32> to vector<8x128xf32>
    %30 = arith.addf %28, %29 : vector<8x128xf32>
    %c0_21 = arith.constant 0 : index
    %c0_22 = arith.constant 0 : index
    %c0_23 = arith.constant 0 : index
    %31 = vector.load %arg5[%c0_21, %c0_22, %c0_23] : memref<5x8x1xf32, #tpu.memory_space<vmem>>, vector<1x8x1xf32>
    %32 = vector.shape_cast %31 : vector<1x8x1xf32> to vector<8x1xf32>
    %c0_24 = arith.constant 0 : index
    %c0_25 = arith.constant 0 : index
    %c0_26 = arith.constant 0 : index
    %33 = vector.load %arg6[%c0_24, %c0_25, %c0_26] : memref<5x8x1xf32, #tpu.memory_space<vmem>>, vector<1x8x1xf32>
    %34 = vector.shape_cast %33 : vector<1x8x1xf32> to vector<8x1xf32>
    %c0_27 = arith.constant 0 : index
    %c0_28 = arith.constant 0 : index
    %35 = vector.load %arg12[%c0_27, %c0_28] : memref<5x128xf32, #tpu.memory_space<vmem>>, vector<1x128xf32>
    %36 = vector.broadcast %35 : vector<1x128xf32> to vector<8x128xf32>
    %37 = arith.mulf %30, %36 : vector<8x128xf32>
    %cst_29 = arith.constant dense<0.000000e+00> : vector<8xf32>
    %38 = vector.multi_reduction <add>, %37, %cst_29 [1] : vector<8x128xf32> to vector<8xf32>
    %39 = vector.shape_cast %38 : vector<8xf32> to vector<8x1xf32>
    %cst_30 = arith.constant 7.812500e-03 : f32
    %40 = vector.broadcast %cst_30 : f32 to vector<8x1xf32>
    %41 = arith.mulf %39, %40 : vector<8x1xf32>
    %42 = arith.mulf %37, %37 : vector<8x128xf32>
    %cst_31 = arith.constant dense<0.000000e+00> : vector<8xf32>
    %43 = vector.multi_reduction <add>, %42, %cst_31 [1] : vector<8x128xf32> to vector<8xf32>
    %44 = vector.shape_cast %43 : vector<8xf32> to vector<8x1xf32>
    %cst_32 = arith.constant 7.812500e-03 : f32
    %45 = vector.broadcast %cst_32 : f32 to vector<8x1xf32>
    %46 = arith.mulf %44, %45 : vector<8x1xf32>
    %47 = arith.mulf %41, %41 : vector<8x1xf32>
    %48 = arith.subf %46, %47 : vector<8x1xf32>
    %cst_33 = arith.constant 0.000000e+00 : f32
    %49 = vector.broadcast %cst_33 : f32 to vector<8x1xf32>
    %50 = arith.maximumf %48, %49 : vector<8x1xf32>
    %51 = vector.broadcast %41 : vector<8x1xf32> to vector<8x128xf32>
    %52 = arith.subf %30, %51 : vector<8x128xf32>
    %cst_34 = arith.constant 9.99999974E-6 : f32
    %53 = vector.broadcast %cst_34 : f32 to vector<8x1xf32>
    %54 = arith.addf %50, %53 : vector<8x1xf32>
    %55 = math.rsqrt %54 : vector<8x1xf32>
    %56 = vector.broadcast %55 : vector<8x1xf32> to vector<8x128xf32>
    %57 = arith.mulf %52, %56 : vector<8x128xf32>
    %58 = vector.broadcast %32 : vector<8x1xf32> to vector<8x128xf32>
    %59 = arith.mulf %57, %58 : vector<8x128xf32>
    %60 = vector.broadcast %34 : vector<8x1xf32> to vector<8x128xf32>
    %61 = arith.addf %59, %60 : vector<8x128xf32>
    %cst_35 = arith.constant 0.000000e+00 : f32
    %62 = vector.broadcast %cst_35 : f32 to vector<8x128xf32>
    %63 = arith.cmpf ogt, %61, %62 : vector<8x128xf32>
    %cst_36 = arith.constant 0.00999999977 : f32
    %64 = vector.broadcast %cst_36 : f32 to vector<8x128xf32>
    %65 = arith.mulf %64, %61 : vector<8x128xf32>
    %66 = arith.select %63, %61, %65 : vector<8x128xi1>, vector<8x128xf32>
    %c0_37 = arith.constant 0 : index
    %c0_38 = arith.constant 0 : index
    %c0_39 = arith.constant 0 : index
    %67 = vector.load %arg7[%c0_37, %c0_38, %c0_39] : memref<5x8x24xf32, #tpu.memory_space<vmem>>, vector<1x8x24xf32>
    %68 = vector.shape_cast %67 : vector<1x8x24xf32> to vector<8x24xf32>
    %c0_40 = arith.constant 0 : index
    %c0_41 = arith.constant 0 : index
    %c0_42 = arith.constant 0 : index
    %69 = vector.load %arg8[%c0_40, %c0_41, %c0_42] : memref<5x8x1xf32, #tpu.memory_space<vmem>>, vector<1x8x1xf32>
    %70 = vector.shape_cast %69 : vector<1x8x1xf32> to vector<8x1xf32>
    %c0_43 = arith.constant 0 : index
    %c0_44 = arith.constant 0 : index
    %71 = vector.load %arg11[%c0_43, %c0_44] : memref<15x128xf32, #tpu.memory_space<vmem>>, vector<1x128xf32>
    %c1_i32_45 = arith.constant 1 : i32
    %72 = tpu.dynamic_rotate %66 by %c1_i32_45 dim 1 : vector<8x128xf32>, i32 -> vector<8x128xf32>
    %73 = vector.broadcast %71 : vector<1x128xf32> to vector<8x128xf32>
    %74 = arith.mulf %72, %73 : vector<8x128xf32>
    %c2_46 = arith.constant 2 : index
    %c0_47 = arith.constant 0 : index
    %75 = vector.load %arg11[%c2_46, %c0_47] : memref<15x128xf32, #tpu.memory_space<vmem>>, vector<1x128xf32>
    %c127_i32_48 = arith.constant 127 : i32
    %76 = tpu.dynamic_rotate %66 by %c127_i32_48 dim 1 : vector<8x128xf32>, i32 -> vector<8x128xf32>
    %77 = vector.broadcast %75 : vector<1x128xf32> to vector<8x128xf32>
    %78 = arith.mulf %76, %77 : vector<8x128xf32>
    %79 = tpu.concatenate %74, %66, %78 in 0 : vector<8x128xf32>, vector<8x128xf32>, vector<8x128xf32> -> vector<24x128xf32>
    %cst_49 = arith.constant dense<0.000000e+00> : vector<8x128xf32>
    %80 = tpu.matmul %68, %79, %cst_49 {dimension_numbers = #tpu.dot_dimension_numbers<[1], [0], [0], [1], [0, 0, 1, 1], [], []>} : vector<8x24xf32>, vector<24x128xf32>, vector<8x128xf32> -> vector<8x128xf32>
    %81 = vector.broadcast %70 : vector<8x1xf32> to vector<8x128xf32>
    %82 = arith.addf %80, %81 : vector<8x128xf32>
    %c0_50 = arith.constant 0 : index
    %c0_51 = arith.constant 0 : index
    %c0_52 = arith.constant 0 : index
    %83 = vector.load %arg9[%c0_50, %c0_51, %c0_52] : memref<5x8x1xf32, #tpu.memory_space<vmem>>, vector<1x8x1xf32>
    %84 = vector.shape_cast %83 : vector<1x8x1xf32> to vector<8x1xf32>
    %c0_53 = arith.constant 0 : index
    %c0_54 = arith.constant 0 : index
    %c0_55 = arith.constant 0 : index
    %85 = vector.load %arg10[%c0_53, %c0_54, %c0_55] : memref<5x8x1xf32, #tpu.memory_space<vmem>>, vector<1x8x1xf32>
    %86 = vector.shape_cast %85 : vector<1x8x1xf32> to vector<8x1xf32>
    %c0_56 = arith.constant 0 : index
    %c0_57 = arith.constant 0 : index
    %87 = vector.load %arg12[%c0_56, %c0_57] : memref<5x128xf32, #tpu.memory_space<vmem>>, vector<1x128xf32>
    %88 = vector.broadcast %87 : vector<1x128xf32> to vector<8x128xf32>
    %89 = arith.mulf %82, %88 : vector<8x128xf32>
    %cst_58 = arith.constant dense<0.000000e+00> : vector<8xf32>
    %90 = vector.multi_reduction <add>, %89, %cst_58 [1] : vector<8x128xf32> to vector<8xf32>
    %91 = vector.shape_cast %90 : vector<8xf32> to vector<8x1xf32>
    %cst_59 = arith.constant 7.812500e-03 : f32
    %92 = vector.broadcast %cst_59 : f32 to vector<8x1xf32>
    %93 = arith.mulf %91, %92 : vector<8x1xf32>
    %94 = arith.mulf %89, %89 : vector<8x128xf32>
    %cst_60 = arith.constant dense<0.000000e+00> : vector<8xf32>
    %95 = vector.multi_reduction <add>, %94, %cst_60 [1] : vector<8x128xf32> to vector<8xf32>
    %96 = vector.shape_cast %95 : vector<8xf32> to vector<8x1xf32>
    %cst_61 = arith.constant 7.812500e-03 : f32
    %97 = vector.broadcast %cst_61 : f32 to vector<8x1xf32>
    %98 = arith.mulf %96, %97 : vector<8x1xf32>
    %99 = arith.mulf %93, %93 : vector<8x1xf32>
    %100 = arith.subf %98, %99 : vector<8x1xf32>
    %cst_62 = arith.constant 0.000000e+00 : f32
    %101 = vector.broadcast %cst_62 : f32 to vector<8x1xf32>
    %102 = arith.maximumf %100, %101 : vector<8x1xf32>
    %103 = vector.broadcast %93 : vector<8x1xf32> to vector<8x128xf32>
    %104 = arith.subf %82, %103 : vector<8x128xf32>
    %cst_63 = arith.constant 9.99999974E-6 : f32
    %105 = vector.broadcast %cst_63 : f32 to vector<8x1xf32>
    %106 = arith.addf %102, %105 : vector<8x1xf32>
    %107 = math.rsqrt %106 : vector<8x1xf32>
    %108 = vector.broadcast %107 : vector<8x1xf32> to vector<8x128xf32>
    %109 = arith.mulf %104, %108 : vector<8x128xf32>
    %110 = vector.broadcast %84 : vector<8x1xf32> to vector<8x128xf32>
    %111 = arith.mulf %109, %110 : vector<8x128xf32>
    %112 = vector.broadcast %86 : vector<8x1xf32> to vector<8x128xf32>
    %113 = arith.addf %111, %112 : vector<8x128xf32>
    %114 = arith.addf %113, %14 : vector<8x128xf32>
    %cst_64 = arith.constant 0.000000e+00 : f32
    %115 = vector.broadcast %cst_64 : f32 to vector<8x128xf32>
    %116 = arith.cmpf ogt, %114, %115 : vector<8x128xf32>
    %cst_65 = arith.constant 0.00999999977 : f32
    %117 = vector.broadcast %cst_65 : f32 to vector<8x128xf32>
    %118 = arith.mulf %117, %114 : vector<8x128xf32>
    %119 = arith.select %116, %114, %118 : vector<8x128xi1>, vector<8x128xf32>
    %c127_i32_66 = arith.constant 127 : i32
    %120 = tpu.dynamic_rotate %119 by %c127_i32_66 dim 1 : vector<8x128xf32>, i32 -> vector<8x128xf32>
    %121 = arith.maximumf %119, %120 : vector<8x128xf32>
    %c0_67 = arith.constant 0 : index
    %c0_68 = arith.constant 0 : index
    %c0_69 = arith.constant 0 : index
    %122 = vector.load %arg13[%c0_67, %c0_68, %c0_69] : memref<5x128x128xf32, #tpu.memory_space<vmem>>, vector<1x128x128xf32>
    %123 = vector.shape_cast %122 : vector<1x128x128xf32> to vector<128x128xf32>
    %cst_70 = arith.constant dense<0.000000e+00> : vector<8x128xf32>
    %124 = tpu.matmul %121, %123, %cst_70 {dimension_numbers = #tpu.dot_dimension_numbers<[1], [0], [0], [1], [0, 0, 1, 1], [], []>} : vector<8x128xf32>, vector<128x128xf32>, vector<8x128xf32> -> vector<8x128xf32>
    %c1 = arith.constant 1 : index
    %c0_71 = arith.constant 0 : index
    %c0_72 = arith.constant 0 : index
    %125 = vector.load %arg3[%c1, %c0_71, %c0_72] : memref<5x8x24xf32, #tpu.memory_space<vmem>>, vector<1x8x24xf32>
    %126 = vector.shape_cast %125 : vector<1x8x24xf32> to vector<8x24xf32>
    %c1_73 = arith.constant 1 : index
    %c0_74 = arith.constant 0 : index
    %c0_75 = arith.constant 0 : index
    %127 = vector.load %arg4[%c1_73, %c0_74, %c0_75] : memref<5x8x1xf32, #tpu.memory_space<vmem>>, vector<1x8x1xf32>
    %128 = vector.shape_cast %127 : vector<1x8x1xf32> to vector<8x1xf32>
    %c3 = arith.constant 3 : index
    %c0_76 = arith.constant 0 : index
    %129 = vector.load %arg11[%c3, %c0_76] : memref<15x128xf32, #tpu.memory_space<vmem>>, vector<1x128xf32>
    %c1_i32_77 = arith.constant 1 : i32
    %130 = tpu.dynamic_rotate %124 by %c1_i32_77 dim 1 : vector<8x128xf32>, i32 -> vector<8x128xf32>
    %131 = vector.broadcast %129 : vector<1x128xf32> to vector<8x128xf32>
    %132 = arith.mulf %130, %131 : vector<8x128xf32>
    %c5 = arith.constant 5 : index
    %c0_78 = arith.constant 0 : index
    %133 = vector.load %arg11[%c5, %c0_78] : memref<15x128xf32, #tpu.memory_space<vmem>>, vector<1x128xf32>
    %c127_i32_79 = arith.constant 127 : i32
    %134 = tpu.dynamic_rotate %124 by %c127_i32_79 dim 1 : vector<8x128xf32>, i32 -> vector<8x128xf32>
    %135 = vector.broadcast %133 : vector<1x128xf32> to vector<8x128xf32>
    %136 = arith.mulf %134, %135 : vector<8x128xf32>
    %137 = tpu.concatenate %132, %124, %136 in 0 : vector<8x128xf32>, vector<8x128xf32>, vector<8x128xf32> -> vector<24x128xf32>
    %cst_80 = arith.constant dense<0.000000e+00> : vector<8x128xf32>
    %138 = tpu.matmul %126, %137, %cst_80 {dimension_numbers = #tpu.dot_dimension_numbers<[1], [0], [0], [1], [0, 0, 1, 1], [], []>} : vector<8x24xf32>, vector<24x128xf32>, vector<8x128xf32> -> vector<8x128xf32>
    %139 = vector.broadcast %128 : vector<8x1xf32> to vector<8x128xf32>
    %140 = arith.addf %138, %139 : vector<8x128xf32>
    %c1_81 = arith.constant 1 : index
    %c0_82 = arith.constant 0 : index
    %c0_83 = arith.constant 0 : index
    %141 = vector.load %arg5[%c1_81, %c0_82, %c0_83] : memref<5x8x1xf32, #tpu.memory_space<vmem>>, vector<1x8x1xf32>
    %142 = vector.shape_cast %141 : vector<1x8x1xf32> to vector<8x1xf32>
    %c1_84 = arith.constant 1 : index
    %c0_85 = arith.constant 0 : index
    %c0_86 = arith.constant 0 : index
    %143 = vector.load %arg6[%c1_84, %c0_85, %c0_86] : memref<5x8x1xf32, #tpu.memory_space<vmem>>, vector<1x8x1xf32>
    %144 = vector.shape_cast %143 : vector<1x8x1xf32> to vector<8x1xf32>
    %c1_87 = arith.constant 1 : index
    %c0_88 = arith.constant 0 : index
    %145 = vector.load %arg12[%c1_87, %c0_88] : memref<5x128xf32, #tpu.memory_space<vmem>>, vector<1x128xf32>
    %146 = vector.broadcast %145 : vector<1x128xf32> to vector<8x128xf32>
    %147 = arith.mulf %140, %146 : vector<8x128xf32>
    %cst_89 = arith.constant dense<0.000000e+00> : vector<8xf32>
    %148 = vector.multi_reduction <add>, %147, %cst_89 [1] : vector<8x128xf32> to vector<8xf32>
    %149 = vector.shape_cast %148 : vector<8xf32> to vector<8x1xf32>
    %cst_90 = arith.constant 1.562500e-02 : f32
    %150 = vector.broadcast %cst_90 : f32 to vector<8x1xf32>
    %151 = arith.mulf %149, %150 : vector<8x1xf32>
    %152 = arith.mulf %147, %147 : vector<8x128xf32>
    %cst_91 = arith.constant dense<0.000000e+00> : vector<8xf32>
    %153 = vector.multi_reduction <add>, %152, %cst_91 [1] : vector<8x128xf32> to vector<8xf32>
    %154 = vector.shape_cast %153 : vector<8xf32> to vector<8x1xf32>
    %cst_92 = arith.constant 1.562500e-02 : f32
    %155 = vector.broadcast %cst_92 : f32 to vector<8x1xf32>
    %156 = arith.mulf %154, %155 : vector<8x1xf32>
    %157 = arith.mulf %151, %151 : vector<8x1xf32>
    %158 = arith.subf %156, %157 : vector<8x1xf32>
    %cst_93 = arith.constant 0.000000e+00 : f32
    %159 = vector.broadcast %cst_93 : f32 to vector<8x1xf32>
    %160 = arith.maximumf %158, %159 : vector<8x1xf32>
    %161 = vector.broadcast %151 : vector<8x1xf32> to vector<8x128xf32>
    %162 = arith.subf %140, %161 : vector<8x128xf32>
    %cst_94 = arith.constant 9.99999974E-6 : f32
    %163 = vector.broadcast %cst_94 : f32 to vector<8x1xf32>
    %164 = arith.addf %160, %163 : vector<8x1xf32>
    %165 = math.rsqrt %164 : vector<8x1xf32>
    %166 = vector.broadcast %165 : vector<8x1xf32> to vector<8x128xf32>
    %167 = arith.mulf %162, %166 : vector<8x128xf32>
    %168 = vector.broadcast %142 : vector<8x1xf32> to vector<8x128xf32>
    %169 = arith.mulf %167, %168 : vector<8x128xf32>
    %170 = vector.broadcast %144 : vector<8x1xf32> to vector<8x128xf32>
    %171 = arith.addf %169, %170 : vector<8x128xf32>
    %cst_95 = arith.constant 0.000000e+00 : f32
    %172 = vector.broadcast %cst_95 : f32 to vector<8x128xf32>
    %173 = arith.cmpf ogt, %171, %172 : vector<8x128xf32>
    %cst_96 = arith.constant 0.00999999977 : f32
    %174 = vector.broadcast %cst_96 : f32 to vector<8x128xf32>
    %175 = arith.mulf %174, %171 : vector<8x128xf32>
    %176 = arith.select %173, %171, %175 : vector<8x128xi1>, vector<8x128xf32>
    %c1_97 = arith.constant 1 : index
    %c0_98 = arith.constant 0 : index
    %c0_99 = arith.constant 0 : index
    %177 = vector.load %arg7[%c1_97, %c0_98, %c0_99] : memref<5x8x24xf32, #tpu.memory_space<vmem>>, vector<1x8x24xf32>
    %178 = vector.shape_cast %177 : vector<1x8x24xf32> to vector<8x24xf32>
    %c1_100 = arith.constant 1 : index
    %c0_101 = arith.constant 0 : index
    %c0_102 = arith.constant 0 : index
    %179 = vector.load %arg8[%c1_100, %c0_101, %c0_102] : memref<5x8x1xf32, #tpu.memory_space<vmem>>, vector<1x8x1xf32>
    %180 = vector.shape_cast %179 : vector<1x8x1xf32> to vector<8x1xf32>
    %c3_103 = arith.constant 3 : index
    %c0_104 = arith.constant 0 : index
    %181 = vector.load %arg11[%c3_103, %c0_104] : memref<15x128xf32, #tpu.memory_space<vmem>>, vector<1x128xf32>
    %c1_i32_105 = arith.constant 1 : i32
    %182 = tpu.dynamic_rotate %176 by %c1_i32_105 dim 1 : vector<8x128xf32>, i32 -> vector<8x128xf32>
    %183 = vector.broadcast %181 : vector<1x128xf32> to vector<8x128xf32>
    %184 = arith.mulf %182, %183 : vector<8x128xf32>
    %c5_106 = arith.constant 5 : index
    %c0_107 = arith.constant 0 : index
    %185 = vector.load %arg11[%c5_106, %c0_107] : memref<15x128xf32, #tpu.memory_space<vmem>>, vector<1x128xf32>
    %c127_i32_108 = arith.constant 127 : i32
    %186 = tpu.dynamic_rotate %176 by %c127_i32_108 dim 1 : vector<8x128xf32>, i32 -> vector<8x128xf32>
    %187 = vector.broadcast %185 : vector<1x128xf32> to vector<8x128xf32>
    %188 = arith.mulf %186, %187 : vector<8x128xf32>
    %189 = tpu.concatenate %184, %176, %188 in 0 : vector<8x128xf32>, vector<8x128xf32>, vector<8x128xf32> -> vector<24x128xf32>
    %cst_109 = arith.constant dense<0.000000e+00> : vector<8x128xf32>
    %190 = tpu.matmul %178, %189, %cst_109 {dimension_numbers = #tpu.dot_dimension_numbers<[1], [0], [0], [1], [0, 0, 1, 1], [], []>} : vector<8x24xf32>, vector<24x128xf32>, vector<8x128xf32> -> vector<8x128xf32>
    %191 = vector.broadcast %180 : vector<8x1xf32> to vector<8x128xf32>
    %192 = arith.addf %190, %191 : vector<8x128xf32>
    %c1_110 = arith.constant 1 : index
    %c0_111 = arith.constant 0 : index
    %c0_112 = arith.constant 0 : index
    %193 = vector.load %arg9[%c1_110, %c0_111, %c0_112] : memref<5x8x1xf32, #tpu.memory_space<vmem>>, vector<1x8x1xf32>
    %194 = vector.shape_cast %193 : vector<1x8x1xf32> to vector<8x1xf32>
    %c1_113 = arith.constant 1 : index
    %c0_114 = arith.constant 0 : index
    %c0_115 = arith.constant 0 : index
    %195 = vector.load %arg10[%c1_113, %c0_114, %c0_115] : memref<5x8x1xf32, #tpu.memory_space<vmem>>, vector<1x8x1xf32>
    %196 = vector.shape_cast %195 : vector<1x8x1xf32> to vector<8x1xf32>
    %c1_116 = arith.constant 1 : index
    %c0_117 = arith.constant 0 : index
    %197 = vector.load %arg12[%c1_116, %c0_117] : memref<5x128xf32, #tpu.memory_space<vmem>>, vector<1x128xf32>
    %198 = vector.broadcast %197 : vector<1x128xf32> to vector<8x128xf32>
    %199 = arith.mulf %192, %198 : vector<8x128xf32>
    %cst_118 = arith.constant dense<0.000000e+00> : vector<8xf32>
    %200 = vector.multi_reduction <add>, %199, %cst_118 [1] : vector<8x128xf32> to vector<8xf32>
    %201 = vector.shape_cast %200 : vector<8xf32> to vector<8x1xf32>
    %cst_119 = arith.constant 1.562500e-02 : f32
    %202 = vector.broadcast %cst_119 : f32 to vector<8x1xf32>
    %203 = arith.mulf %201, %202 : vector<8x1xf32>
    %204 = arith.mulf %199, %199 : vector<8x128xf32>
    %cst_120 = arith.constant dense<0.000000e+00> : vector<8xf32>
    %205 = vector.multi_reduction <add>, %204, %cst_120 [1] : vector<8x128xf32> to vector<8xf32>
    %206 = vector.shape_cast %205 : vector<8xf32> to vector<8x1xf32>
    %cst_121 = arith.constant 1.562500e-02 : f32
    %207 = vector.broadcast %cst_121 : f32 to vector<8x1xf32>
    %208 = arith.mulf %206, %207 : vector<8x1xf32>
    %209 = arith.mulf %203, %203 : vector<8x1xf32>
    %210 = arith.subf %208, %209 : vector<8x1xf32>
    %cst_122 = arith.constant 0.000000e+00 : f32
    %211 = vector.broadcast %cst_122 : f32 to vector<8x1xf32>
    %212 = arith.maximumf %210, %211 : vector<8x1xf32>
    %213 = vector.broadcast %203 : vector<8x1xf32> to vector<8x128xf32>
    %214 = arith.subf %192, %213 : vector<8x128xf32>
    %cst_123 = arith.constant 9.99999974E-6 : f32
    %215 = vector.broadcast %cst_123 : f32 to vector<8x1xf32>
    %216 = arith.addf %212, %215 : vector<8x1xf32>
    %217 = math.rsqrt %216 : vector<8x1xf32>
    %218 = vector.broadcast %217 : vector<8x1xf32> to vector<8x128xf32>
    %219 = arith.mulf %214, %218 : vector<8x128xf32>
    %220 = vector.broadcast %194 : vector<8x1xf32> to vector<8x128xf32>
    %221 = arith.mulf %219, %220 : vector<8x128xf32>
    %222 = vector.broadcast %196 : vector<8x1xf32> to vector<8x128xf32>
    %223 = arith.addf %221, %222 : vector<8x128xf32>
    %224 = arith.addf %223, %124 : vector<8x128xf32>
    %cst_124 = arith.constant 0.000000e+00 : f32
    %225 = vector.broadcast %cst_124 : f32 to vector<8x128xf32>
    %226 = arith.cmpf ogt, %224, %225 : vector<8x128xf32>
    %cst_125 = arith.constant 0.00999999977 : f32
    %227 = vector.broadcast %cst_125 : f32 to vector<8x128xf32>
    %228 = arith.mulf %227, %224 : vector<8x128xf32>
    %229 = arith.select %226, %224, %228 : vector<8x128xi1>, vector<8x128xf32>
    %c127_i32_126 = arith.constant 127 : i32
    %230 = tpu.dynamic_rotate %229 by %c127_i32_126 dim 1 : vector<8x128xf32>, i32 -> vector<8x128xf32>
    %231 = arith.maximumf %229, %230 : vector<8x128xf32>
    %c1_127 = arith.constant 1 : index
    %c0_128 = arith.constant 0 : index
    %c0_129 = arith.constant 0 : index
    %232 = vector.load %arg13[%c1_127, %c0_128, %c0_129] : memref<5x128x128xf32, #tpu.memory_space<vmem>>, vector<1x128x128xf32>
    %233 = vector.shape_cast %232 : vector<1x128x128xf32> to vector<128x128xf32>
    %cst_130 = arith.constant dense<0.000000e+00> : vector<8x128xf32>
    %234 = tpu.matmul %231, %233, %cst_130 {dimension_numbers = #tpu.dot_dimension_numbers<[1], [0], [0], [1], [0, 0, 1, 1], [], []>} : vector<8x128xf32>, vector<128x128xf32>, vector<8x128xf32> -> vector<8x128xf32>
    %c2_131 = arith.constant 2 : index
    %c0_132 = arith.constant 0 : index
    %c0_133 = arith.constant 0 : index
    %235 = vector.load %arg3[%c2_131, %c0_132, %c0_133] : memref<5x8x24xf32, #tpu.memory_space<vmem>>, vector<1x8x24xf32>
    %236 = vector.shape_cast %235 : vector<1x8x24xf32> to vector<8x24xf32>
    %c2_134 = arith.constant 2 : index
    %c0_135 = arith.constant 0 : index
    %c0_136 = arith.constant 0 : index
    %237 = vector.load %arg4[%c2_134, %c0_135, %c0_136] : memref<5x8x1xf32, #tpu.memory_space<vmem>>, vector<1x8x1xf32>
    %238 = vector.shape_cast %237 : vector<1x8x1xf32> to vector<8x1xf32>
    %c6 = arith.constant 6 : index
    %c0_137 = arith.constant 0 : index
    %239 = vector.load %arg11[%c6, %c0_137] : memref<15x128xf32, #tpu.memory_space<vmem>>, vector<1x128xf32>
    %c1_i32_138 = arith.constant 1 : i32
    %240 = tpu.dynamic_rotate %234 by %c1_i32_138 dim 1 : vector<8x128xf32>, i32 -> vector<8x128xf32>
    %241 = vector.broadcast %239 : vector<1x128xf32> to vector<8x128xf32>
    %242 = arith.mulf %240, %241 : vector<8x128xf32>
    %c8 = arith.constant 8 : index
    %c0_139 = arith.constant 0 : index
    %243 = vector.load %arg11[%c8, %c0_139] : memref<15x128xf32, #tpu.memory_space<vmem>>, vector<1x128xf32>
    %c127_i32_140 = arith.constant 127 : i32
    %244 = tpu.dynamic_rotate %234 by %c127_i32_140 dim 1 : vector<8x128xf32>, i32 -> vector<8x128xf32>
    %245 = vector.broadcast %243 : vector<1x128xf32> to vector<8x128xf32>
    %246 = arith.mulf %244, %245 : vector<8x128xf32>
    %247 = tpu.concatenate %242, %234, %246 in 0 : vector<8x128xf32>, vector<8x128xf32>, vector<8x128xf32> -> vector<24x128xf32>
    %cst_141 = arith.constant dense<0.000000e+00> : vector<8x128xf32>
    %248 = tpu.matmul %236, %247, %cst_141 {dimension_numbers = #tpu.dot_dimension_numbers<[1], [0], [0], [1], [0, 0, 1, 1], [], []>} : vector<8x24xf32>, vector<24x128xf32>, vector<8x128xf32> -> vector<8x128xf32>
    %249 = vector.broadcast %238 : vector<8x1xf32> to vector<8x128xf32>
    %250 = arith.addf %248, %249 : vector<8x128xf32>
    %c2_142 = arith.constant 2 : index
    %c0_143 = arith.constant 0 : index
    %c0_144 = arith.constant 0 : index
    %251 = vector.load %arg5[%c2_142, %c0_143, %c0_144] : memref<5x8x1xf32, #tpu.memory_space<vmem>>, vector<1x8x1xf32>
    %252 = vector.shape_cast %251 : vector<1x8x1xf32> to vector<8x1xf32>
    %c2_145 = arith.constant 2 : index
    %c0_146 = arith.constant 0 : index
    %c0_147 = arith.constant 0 : index
    %253 = vector.load %arg6[%c2_145, %c0_146, %c0_147] : memref<5x8x1xf32, #tpu.memory_space<vmem>>, vector<1x8x1xf32>
    %254 = vector.shape_cast %253 : vector<1x8x1xf32> to vector<8x1xf32>
    %c2_148 = arith.constant 2 : index
    %c0_149 = arith.constant 0 : index
    %255 = vector.load %arg12[%c2_148, %c0_149] : memref<5x128xf32, #tpu.memory_space<vmem>>, vector<1x128xf32>
    %256 = vector.broadcast %255 : vector<1x128xf32> to vector<8x128xf32>
    %257 = arith.mulf %250, %256 : vector<8x128xf32>
    %cst_150 = arith.constant dense<0.000000e+00> : vector<8xf32>
    %258 = vector.multi_reduction <add>, %257, %cst_150 [1] : vector<8x128xf32> to vector<8xf32>
    %259 = vector.shape_cast %258 : vector<8xf32> to vector<8x1xf32>
    %cst_151 = arith.constant 3.125000e-02 : f32
    %260 = vector.broadcast %cst_151 : f32 to vector<8x1xf32>
    %261 = arith.mulf %259, %260 : vector<8x1xf32>
    %262 = arith.mulf %257, %257 : vector<8x128xf32>
    %cst_152 = arith.constant dense<0.000000e+00> : vector<8xf32>
    %263 = vector.multi_reduction <add>, %262, %cst_152 [1] : vector<8x128xf32> to vector<8xf32>
    %264 = vector.shape_cast %263 : vector<8xf32> to vector<8x1xf32>
    %cst_153 = arith.constant 3.125000e-02 : f32
    %265 = vector.broadcast %cst_153 : f32 to vector<8x1xf32>
    %266 = arith.mulf %264, %265 : vector<8x1xf32>
    %267 = arith.mulf %261, %261 : vector<8x1xf32>
    %268 = arith.subf %266, %267 : vector<8x1xf32>
    %cst_154 = arith.constant 0.000000e+00 : f32
    %269 = vector.broadcast %cst_154 : f32 to vector<8x1xf32>
    %270 = arith.maximumf %268, %269 : vector<8x1xf32>
    %271 = vector.broadcast %261 : vector<8x1xf32> to vector<8x128xf32>
    %272 = arith.subf %250, %271 : vector<8x128xf32>
    %cst_155 = arith.constant 9.99999974E-6 : f32
    %273 = vector.broadcast %cst_155 : f32 to vector<8x1xf32>
    %274 = arith.addf %270, %273 : vector<8x1xf32>
    %275 = math.rsqrt %274 : vector<8x1xf32>
    %276 = vector.broadcast %275 : vector<8x1xf32> to vector<8x128xf32>
    %277 = arith.mulf %272, %276 : vector<8x128xf32>
    %278 = vector.broadcast %252 : vector<8x1xf32> to vector<8x128xf32>
    %279 = arith.mulf %277, %278 : vector<8x128xf32>
    %280 = vector.broadcast %254 : vector<8x1xf32> to vector<8x128xf32>
    %281 = arith.addf %279, %280 : vector<8x128xf32>
    %cst_156 = arith.constant 0.000000e+00 : f32
    %282 = vector.broadcast %cst_156 : f32 to vector<8x128xf32>
    %283 = arith.cmpf ogt, %281, %282 : vector<8x128xf32>
    %cst_157 = arith.constant 0.00999999977 : f32
    %284 = vector.broadcast %cst_157 : f32 to vector<8x128xf32>
    %285 = arith.mulf %284, %281 : vector<8x128xf32>
    %286 = arith.select %283, %281, %285 : vector<8x128xi1>, vector<8x128xf32>
    %c2_158 = arith.constant 2 : index
    %c0_159 = arith.constant 0 : index
    %c0_160 = arith.constant 0 : index
    %287 = vector.load %arg7[%c2_158, %c0_159, %c0_160] : memref<5x8x24xf32, #tpu.memory_space<vmem>>, vector<1x8x24xf32>
    %288 = vector.shape_cast %287 : vector<1x8x24xf32> to vector<8x24xf32>
    %c2_161 = arith.constant 2 : index
    %c0_162 = arith.constant 0 : index
    %c0_163 = arith.constant 0 : index
    %289 = vector.load %arg8[%c2_161, %c0_162, %c0_163] : memref<5x8x1xf32, #tpu.memory_space<vmem>>, vector<1x8x1xf32>
    %290 = vector.shape_cast %289 : vector<1x8x1xf32> to vector<8x1xf32>
    %c6_164 = arith.constant 6 : index
    %c0_165 = arith.constant 0 : index
    %291 = vector.load %arg11[%c6_164, %c0_165] : memref<15x128xf32, #tpu.memory_space<vmem>>, vector<1x128xf32>
    %c1_i32_166 = arith.constant 1 : i32
    %292 = tpu.dynamic_rotate %286 by %c1_i32_166 dim 1 : vector<8x128xf32>, i32 -> vector<8x128xf32>
    %293 = vector.broadcast %291 : vector<1x128xf32> to vector<8x128xf32>
    %294 = arith.mulf %292, %293 : vector<8x128xf32>
    %c8_167 = arith.constant 8 : index
    %c0_168 = arith.constant 0 : index
    %295 = vector.load %arg11[%c8_167, %c0_168] : memref<15x128xf32, #tpu.memory_space<vmem>>, vector<1x128xf32>
    %c127_i32_169 = arith.constant 127 : i32
    %296 = tpu.dynamic_rotate %286 by %c127_i32_169 dim 1 : vector<8x128xf32>, i32 -> vector<8x128xf32>
    %297 = vector.broadcast %295 : vector<1x128xf32> to vector<8x128xf32>
    %298 = arith.mulf %296, %297 : vector<8x128xf32>
    %299 = tpu.concatenate %294, %286, %298 in 0 : vector<8x128xf32>, vector<8x128xf32>, vector<8x128xf32> -> vector<24x128xf32>
    %cst_170 = arith.constant dense<0.000000e+00> : vector<8x128xf32>
    %300 = tpu.matmul %288, %299, %cst_170 {dimension_numbers = #tpu.dot_dimension_numbers<[1], [0], [0], [1], [0, 0, 1, 1], [], []>} : vector<8x24xf32>, vector<24x128xf32>, vector<8x128xf32> -> vector<8x128xf32>
    %301 = vector.broadcast %290 : vector<8x1xf32> to vector<8x128xf32>
    %302 = arith.addf %300, %301 : vector<8x128xf32>
    %c2_171 = arith.constant 2 : index
    %c0_172 = arith.constant 0 : index
    %c0_173 = arith.constant 0 : index
    %303 = vector.load %arg9[%c2_171, %c0_172, %c0_173] : memref<5x8x1xf32, #tpu.memory_space<vmem>>, vector<1x8x1xf32>
    %304 = vector.shape_cast %303 : vector<1x8x1xf32> to vector<8x1xf32>
    %c2_174 = arith.constant 2 : index
    %c0_175 = arith.constant 0 : index
    %c0_176 = arith.constant 0 : index
    %305 = vector.load %arg10[%c2_174, %c0_175, %c0_176] : memref<5x8x1xf32, #tpu.memory_space<vmem>>, vector<1x8x1xf32>
    %306 = vector.shape_cast %305 : vector<1x8x1xf32> to vector<8x1xf32>
    %c2_177 = arith.constant 2 : index
    %c0_178 = arith.constant 0 : index
    %307 = vector.load %arg12[%c2_177, %c0_178] : memref<5x128xf32, #tpu.memory_space<vmem>>, vector<1x128xf32>
    %308 = vector.broadcast %307 : vector<1x128xf32> to vector<8x128xf32>
    %309 = arith.mulf %302, %308 : vector<8x128xf32>
    %cst_179 = arith.constant dense<0.000000e+00> : vector<8xf32>
    %310 = vector.multi_reduction <add>, %309, %cst_179 [1] : vector<8x128xf32> to vector<8xf32>
    %311 = vector.shape_cast %310 : vector<8xf32> to vector<8x1xf32>
    %cst_180 = arith.constant 3.125000e-02 : f32
    %312 = vector.broadcast %cst_180 : f32 to vector<8x1xf32>
    %313 = arith.mulf %311, %312 : vector<8x1xf32>
    %314 = arith.mulf %309, %309 : vector<8x128xf32>
    %cst_181 = arith.constant dense<0.000000e+00> : vector<8xf32>
    %315 = vector.multi_reduction <add>, %314, %cst_181 [1] : vector<8x128xf32> to vector<8xf32>
    %316 = vector.shape_cast %315 : vector<8xf32> to vector<8x1xf32>
    %cst_182 = arith.constant 3.125000e-02 : f32
    %317 = vector.broadcast %cst_182 : f32 to vector<8x1xf32>
    %318 = arith.mulf %316, %317 : vector<8x1xf32>
    %319 = arith.mulf %313, %313 : vector<8x1xf32>
    %320 = arith.subf %318, %319 : vector<8x1xf32>
    %cst_183 = arith.constant 0.000000e+00 : f32
    %321 = vector.broadcast %cst_183 : f32 to vector<8x1xf32>
    %322 = arith.maximumf %320, %321 : vector<8x1xf32>
    %323 = vector.broadcast %313 : vector<8x1xf32> to vector<8x128xf32>
    %324 = arith.subf %302, %323 : vector<8x128xf32>
    %cst_184 = arith.constant 9.99999974E-6 : f32
    %325 = vector.broadcast %cst_184 : f32 to vector<8x1xf32>
    %326 = arith.addf %322, %325 : vector<8x1xf32>
    %327 = math.rsqrt %326 : vector<8x1xf32>
    %328 = vector.broadcast %327 : vector<8x1xf32> to vector<8x128xf32>
    %329 = arith.mulf %324, %328 : vector<8x128xf32>
    %330 = vector.broadcast %304 : vector<8x1xf32> to vector<8x128xf32>
    %331 = arith.mulf %329, %330 : vector<8x128xf32>
    %332 = vector.broadcast %306 : vector<8x1xf32> to vector<8x128xf32>
    %333 = arith.addf %331, %332 : vector<8x128xf32>
    %334 = arith.addf %333, %234 : vector<8x128xf32>
    %cst_185 = arith.constant 0.000000e+00 : f32
    %335 = vector.broadcast %cst_185 : f32 to vector<8x128xf32>
    %336 = arith.cmpf ogt, %334, %335 : vector<8x128xf32>
    %cst_186 = arith.constant 0.00999999977 : f32
    %337 = vector.broadcast %cst_186 : f32 to vector<8x128xf32>
    %338 = arith.mulf %337, %334 : vector<8x128xf32>
    %339 = arith.select %336, %334, %338 : vector<8x128xi1>, vector<8x128xf32>
    %c127_i32_187 = arith.constant 127 : i32
    %340 = tpu.dynamic_rotate %339 by %c127_i32_187 dim 1 : vector<8x128xf32>, i32 -> vector<8x128xf32>
    %341 = arith.maximumf %339, %340 : vector<8x128xf32>
    %c2_188 = arith.constant 2 : index
    %c0_189 = arith.constant 0 : index
    %c0_190 = arith.constant 0 : index
    %342 = vector.load %arg13[%c2_188, %c0_189, %c0_190] : memref<5x128x128xf32, #tpu.memory_space<vmem>>, vector<1x128x128xf32>
    %343 = vector.shape_cast %342 : vector<1x128x128xf32> to vector<128x128xf32>
    %cst_191 = arith.constant dense<0.000000e+00> : vector<8x128xf32>
    %344 = tpu.matmul %341, %343, %cst_191 {dimension_numbers = #tpu.dot_dimension_numbers<[1], [0], [0], [1], [0, 0, 1, 1], [], []>} : vector<8x128xf32>, vector<128x128xf32>, vector<8x128xf32> -> vector<8x128xf32>
    %c3_192 = arith.constant 3 : index
    %c0_193 = arith.constant 0 : index
    %c0_194 = arith.constant 0 : index
    %345 = vector.load %arg3[%c3_192, %c0_193, %c0_194] : memref<5x8x24xf32, #tpu.memory_space<vmem>>, vector<1x8x24xf32>
    %346 = vector.shape_cast %345 : vector<1x8x24xf32> to vector<8x24xf32>
    %c3_195 = arith.constant 3 : index
    %c0_196 = arith.constant 0 : index
    %c0_197 = arith.constant 0 : index
    %347 = vector.load %arg4[%c3_195, %c0_196, %c0_197] : memref<5x8x1xf32, #tpu.memory_space<vmem>>, vector<1x8x1xf32>
    %348 = vector.shape_cast %347 : vector<1x8x1xf32> to vector<8x1xf32>
    %c9 = arith.constant 9 : index
    %c0_198 = arith.constant 0 : index
    %349 = vector.load %arg11[%c9, %c0_198] : memref<15x128xf32, #tpu.memory_space<vmem>>, vector<1x128xf32>
    %c1_i32_199 = arith.constant 1 : i32
    %350 = tpu.dynamic_rotate %344 by %c1_i32_199 dim 1 : vector<8x128xf32>, i32 -> vector<8x128xf32>
    %351 = vector.broadcast %349 : vector<1x128xf32> to vector<8x128xf32>
    %352 = arith.mulf %350, %351 : vector<8x128xf32>
    %c11 = arith.constant 11 : index
    %c0_200 = arith.constant 0 : index
    %353 = vector.load %arg11[%c11, %c0_200] : memref<15x128xf32, #tpu.memory_space<vmem>>, vector<1x128xf32>
    %c127_i32_201 = arith.constant 127 : i32
    %354 = tpu.dynamic_rotate %344 by %c127_i32_201 dim 1 : vector<8x128xf32>, i32 -> vector<8x128xf32>
    %355 = vector.broadcast %353 : vector<1x128xf32> to vector<8x128xf32>
    %356 = arith.mulf %354, %355 : vector<8x128xf32>
    %357 = tpu.concatenate %352, %344, %356 in 0 : vector<8x128xf32>, vector<8x128xf32>, vector<8x128xf32> -> vector<24x128xf32>
    %cst_202 = arith.constant dense<0.000000e+00> : vector<8x128xf32>
    %358 = tpu.matmul %346, %357, %cst_202 {dimension_numbers = #tpu.dot_dimension_numbers<[1], [0], [0], [1], [0, 0, 1, 1], [], []>} : vector<8x24xf32>, vector<24x128xf32>, vector<8x128xf32> -> vector<8x128xf32>
    %359 = vector.broadcast %348 : vector<8x1xf32> to vector<8x128xf32>
    %360 = arith.addf %358, %359 : vector<8x128xf32>
    %c3_203 = arith.constant 3 : index
    %c0_204 = arith.constant 0 : index
    %c0_205 = arith.constant 0 : index
    %361 = vector.load %arg5[%c3_203, %c0_204, %c0_205] : memref<5x8x1xf32, #tpu.memory_space<vmem>>, vector<1x8x1xf32>
    %362 = vector.shape_cast %361 : vector<1x8x1xf32> to vector<8x1xf32>
    %c3_206 = arith.constant 3 : index
    %c0_207 = arith.constant 0 : index
    %c0_208 = arith.constant 0 : index
    %363 = vector.load %arg6[%c3_206, %c0_207, %c0_208] : memref<5x8x1xf32, #tpu.memory_space<vmem>>, vector<1x8x1xf32>
    %364 = vector.shape_cast %363 : vector<1x8x1xf32> to vector<8x1xf32>
    %c3_209 = arith.constant 3 : index
    %c0_210 = arith.constant 0 : index
    %365 = vector.load %arg12[%c3_209, %c0_210] : memref<5x128xf32, #tpu.memory_space<vmem>>, vector<1x128xf32>
    %366 = vector.broadcast %365 : vector<1x128xf32> to vector<8x128xf32>
    %367 = arith.mulf %360, %366 : vector<8x128xf32>
    %cst_211 = arith.constant dense<0.000000e+00> : vector<8xf32>
    %368 = vector.multi_reduction <add>, %367, %cst_211 [1] : vector<8x128xf32> to vector<8xf32>
    %369 = vector.shape_cast %368 : vector<8xf32> to vector<8x1xf32>
    %cst_212 = arith.constant 6.250000e-02 : f32
    %370 = vector.broadcast %cst_212 : f32 to vector<8x1xf32>
    %371 = arith.mulf %369, %370 : vector<8x1xf32>
    %372 = arith.mulf %367, %367 : vector<8x128xf32>
    %cst_213 = arith.constant dense<0.000000e+00> : vector<8xf32>
    %373 = vector.multi_reduction <add>, %372, %cst_213 [1] : vector<8x128xf32> to vector<8xf32>
    %374 = vector.shape_cast %373 : vector<8xf32> to vector<8x1xf32>
    %cst_214 = arith.constant 6.250000e-02 : f32
    %375 = vector.broadcast %cst_214 : f32 to vector<8x1xf32>
    %376 = arith.mulf %374, %375 : vector<8x1xf32>
    %377 = arith.mulf %371, %371 : vector<8x1xf32>
    %378 = arith.subf %376, %377 : vector<8x1xf32>
    %cst_215 = arith.constant 0.000000e+00 : f32
    %379 = vector.broadcast %cst_215 : f32 to vector<8x1xf32>
    %380 = arith.maximumf %378, %379 : vector<8x1xf32>
    %381 = vector.broadcast %371 : vector<8x1xf32> to vector<8x128xf32>
    %382 = arith.subf %360, %381 : vector<8x128xf32>
    %cst_216 = arith.constant 9.99999974E-6 : f32
    %383 = vector.broadcast %cst_216 : f32 to vector<8x1xf32>
    %384 = arith.addf %380, %383 : vector<8x1xf32>
    %385 = math.rsqrt %384 : vector<8x1xf32>
    %386 = vector.broadcast %385 : vector<8x1xf32> to vector<8x128xf32>
    %387 = arith.mulf %382, %386 : vector<8x128xf32>
    %388 = vector.broadcast %362 : vector<8x1xf32> to vector<8x128xf32>
    %389 = arith.mulf %387, %388 : vector<8x128xf32>
    %390 = vector.broadcast %364 : vector<8x1xf32> to vector<8x128xf32>
    %391 = arith.addf %389, %390 : vector<8x128xf32>
    %cst_217 = arith.constant 0.000000e+00 : f32
    %392 = vector.broadcast %cst_217 : f32 to vector<8x128xf32>
    %393 = arith.cmpf ogt, %391, %392 : vector<8x128xf32>
    %cst_218 = arith.constant 0.00999999977 : f32
    %394 = vector.broadcast %cst_218 : f32 to vector<8x128xf32>
    %395 = arith.mulf %394, %391 : vector<8x128xf32>
    %396 = arith.select %393, %391, %395 : vector<8x128xi1>, vector<8x128xf32>
    %c3_219 = arith.constant 3 : index
    %c0_220 = arith.constant 0 : index
    %c0_221 = arith.constant 0 : index
    %397 = vector.load %arg7[%c3_219, %c0_220, %c0_221] : memref<5x8x24xf32, #tpu.memory_space<vmem>>, vector<1x8x24xf32>
    %398 = vector.shape_cast %397 : vector<1x8x24xf32> to vector<8x24xf32>
    %c3_222 = arith.constant 3 : index
    %c0_223 = arith.constant 0 : index
    %c0_224 = arith.constant 0 : index
    %399 = vector.load %arg8[%c3_222, %c0_223, %c0_224] : memref<5x8x1xf32, #tpu.memory_space<vmem>>, vector<1x8x1xf32>
    %400 = vector.shape_cast %399 : vector<1x8x1xf32> to vector<8x1xf32>
    %c9_225 = arith.constant 9 : index
    %c0_226 = arith.constant 0 : index
    %401 = vector.load %arg11[%c9_225, %c0_226] : memref<15x128xf32, #tpu.memory_space<vmem>>, vector<1x128xf32>
    %c1_i32_227 = arith.constant 1 : i32
    %402 = tpu.dynamic_rotate %396 by %c1_i32_227 dim 1 : vector<8x128xf32>, i32 -> vector<8x128xf32>
    %403 = vector.broadcast %401 : vector<1x128xf32> to vector<8x128xf32>
    %404 = arith.mulf %402, %403 : vector<8x128xf32>
    %c11_228 = arith.constant 11 : index
    %c0_229 = arith.constant 0 : index
    %405 = vector.load %arg11[%c11_228, %c0_229] : memref<15x128xf32, #tpu.memory_space<vmem>>, vector<1x128xf32>
    %c127_i32_230 = arith.constant 127 : i32
    %406 = tpu.dynamic_rotate %396 by %c127_i32_230 dim 1 : vector<8x128xf32>, i32 -> vector<8x128xf32>
    %407 = vector.broadcast %405 : vector<1x128xf32> to vector<8x128xf32>
    %408 = arith.mulf %406, %407 : vector<8x128xf32>
    %409 = tpu.concatenate %404, %396, %408 in 0 : vector<8x128xf32>, vector<8x128xf32>, vector<8x128xf32> -> vector<24x128xf32>
    %cst_231 = arith.constant dense<0.000000e+00> : vector<8x128xf32>
    %410 = tpu.matmul %398, %409, %cst_231 {dimension_numbers = #tpu.dot_dimension_numbers<[1], [0], [0], [1], [0, 0, 1, 1], [], []>} : vector<8x24xf32>, vector<24x128xf32>, vector<8x128xf32> -> vector<8x128xf32>
    %411 = vector.broadcast %400 : vector<8x1xf32> to vector<8x128xf32>
    %412 = arith.addf %410, %411 : vector<8x128xf32>
    %c3_232 = arith.constant 3 : index
    %c0_233 = arith.constant 0 : index
    %c0_234 = arith.constant 0 : index
    %413 = vector.load %arg9[%c3_232, %c0_233, %c0_234] : memref<5x8x1xf32, #tpu.memory_space<vmem>>, vector<1x8x1xf32>
    %414 = vector.shape_cast %413 : vector<1x8x1xf32> to vector<8x1xf32>
    %c3_235 = arith.constant 3 : index
    %c0_236 = arith.constant 0 : index
    %c0_237 = arith.constant 0 : index
    %415 = vector.load %arg10[%c3_235, %c0_236, %c0_237] : memref<5x8x1xf32, #tpu.memory_space<vmem>>, vector<1x8x1xf32>
    %416 = vector.shape_cast %415 : vector<1x8x1xf32> to vector<8x1xf32>
    %c3_238 = arith.constant 3 : index
    %c0_239 = arith.constant 0 : index
    %417 = vector.load %arg12[%c3_238, %c0_239] : memref<5x128xf32, #tpu.memory_space<vmem>>, vector<1x128xf32>
    %418 = vector.broadcast %417 : vector<1x128xf32> to vector<8x128xf32>
    %419 = arith.mulf %412, %418 : vector<8x128xf32>
    %cst_240 = arith.constant dense<0.000000e+00> : vector<8xf32>
    %420 = vector.multi_reduction <add>, %419, %cst_240 [1] : vector<8x128xf32> to vector<8xf32>
    %421 = vector.shape_cast %420 : vector<8xf32> to vector<8x1xf32>
    %cst_241 = arith.constant 6.250000e-02 : f32
    %422 = vector.broadcast %cst_241 : f32 to vector<8x1xf32>
    %423 = arith.mulf %421, %422 : vector<8x1xf32>
    %424 = arith.mulf %419, %419 : vector<8x128xf32>
    %cst_242 = arith.constant dense<0.000000e+00> : vector<8xf32>
    %425 = vector.multi_reduction <add>, %424, %cst_242 [1] : vector<8x128xf32> to vector<8xf32>
    %426 = vector.shape_cast %425 : vector<8xf32> to vector<8x1xf32>
    %cst_243 = arith.constant 6.250000e-02 : f32
    %427 = vector.broadcast %cst_243 : f32 to vector<8x1xf32>
    %428 = arith.mulf %426, %427 : vector<8x1xf32>
    %429 = arith.mulf %423, %423 : vector<8x1xf32>
    %430 = arith.subf %428, %429 : vector<8x1xf32>
    %cst_244 = arith.constant 0.000000e+00 : f32
    %431 = vector.broadcast %cst_244 : f32 to vector<8x1xf32>
    %432 = arith.maximumf %430, %431 : vector<8x1xf32>
    %433 = vector.broadcast %423 : vector<8x1xf32> to vector<8x128xf32>
    %434 = arith.subf %412, %433 : vector<8x128xf32>
    %cst_245 = arith.constant 9.99999974E-6 : f32
    %435 = vector.broadcast %cst_245 : f32 to vector<8x1xf32>
    %436 = arith.addf %432, %435 : vector<8x1xf32>
    %437 = math.rsqrt %436 : vector<8x1xf32>
    %438 = vector.broadcast %437 : vector<8x1xf32> to vector<8x128xf32>
    %439 = arith.mulf %434, %438 : vector<8x128xf32>
    %440 = vector.broadcast %414 : vector<8x1xf32> to vector<8x128xf32>
    %441 = arith.mulf %439, %440 : vector<8x128xf32>
    %442 = vector.broadcast %416 : vector<8x1xf32> to vector<8x128xf32>
    %443 = arith.addf %441, %442 : vector<8x128xf32>
    %444 = arith.addf %443, %344 : vector<8x128xf32>
    %cst_246 = arith.constant 0.000000e+00 : f32
    %445 = vector.broadcast %cst_246 : f32 to vector<8x128xf32>
    %446 = arith.cmpf ogt, %444, %445 : vector<8x128xf32>
    %cst_247 = arith.constant 0.00999999977 : f32
    %447 = vector.broadcast %cst_247 : f32 to vector<8x128xf32>
    %448 = arith.mulf %447, %444 : vector<8x128xf32>
    %449 = arith.select %446, %444, %448 : vector<8x128xi1>, vector<8x128xf32>
    %c127_i32_248 = arith.constant 127 : i32
    %450 = tpu.dynamic_rotate %449 by %c127_i32_248 dim 1 : vector<8x128xf32>, i32 -> vector<8x128xf32>
    %451 = arith.maximumf %449, %450 : vector<8x128xf32>
    %c3_249 = arith.constant 3 : index
    %c0_250 = arith.constant 0 : index
    %c0_251 = arith.constant 0 : index
    %452 = vector.load %arg13[%c3_249, %c0_250, %c0_251] : memref<5x128x128xf32, #tpu.memory_space<vmem>>, vector<1x128x128xf32>
    %453 = vector.shape_cast %452 : vector<1x128x128xf32> to vector<128x128xf32>
    %cst_252 = arith.constant dense<0.000000e+00> : vector<8x128xf32>
    %454 = tpu.matmul %451, %453, %cst_252 {dimension_numbers = #tpu.dot_dimension_numbers<[1], [0], [0], [1], [0, 0, 1, 1], [], []>} : vector<8x128xf32>, vector<128x128xf32>, vector<8x128xf32> -> vector<8x128xf32>
    %c4 = arith.constant 4 : index
    %c0_253 = arith.constant 0 : index
    %c0_254 = arith.constant 0 : index
    %455 = vector.load %arg3[%c4, %c0_253, %c0_254] : memref<5x8x24xf32, #tpu.memory_space<vmem>>, vector<1x8x24xf32>
    %456 = vector.shape_cast %455 : vector<1x8x24xf32> to vector<8x24xf32>
    %c4_255 = arith.constant 4 : index
    %c0_256 = arith.constant 0 : index
    %c0_257 = arith.constant 0 : index
    %457 = vector.load %arg4[%c4_255, %c0_256, %c0_257] : memref<5x8x1xf32, #tpu.memory_space<vmem>>, vector<1x8x1xf32>
    %458 = vector.shape_cast %457 : vector<1x8x1xf32> to vector<8x1xf32>
    %c12 = arith.constant 12 : index
    %c0_258 = arith.constant 0 : index
    %459 = vector.load %arg11[%c12, %c0_258] : memref<15x128xf32, #tpu.memory_space<vmem>>, vector<1x128xf32>
    %c1_i32_259 = arith.constant 1 : i32
    %460 = tpu.dynamic_rotate %454 by %c1_i32_259 dim 1 : vector<8x128xf32>, i32 -> vector<8x128xf32>
    %461 = vector.broadcast %459 : vector<1x128xf32> to vector<8x128xf32>
    %462 = arith.mulf %460, %461 : vector<8x128xf32>
    %c14 = arith.constant 14 : index
    %c0_260 = arith.constant 0 : index
    %463 = vector.load %arg11[%c14, %c0_260] : memref<15x128xf32, #tpu.memory_space<vmem>>, vector<1x128xf32>
    %c127_i32_261 = arith.constant 127 : i32
    %464 = tpu.dynamic_rotate %454 by %c127_i32_261 dim 1 : vector<8x128xf32>, i32 -> vector<8x128xf32>
    %465 = vector.broadcast %463 : vector<1x128xf32> to vector<8x128xf32>
    %466 = arith.mulf %464, %465 : vector<8x128xf32>
    %467 = tpu.concatenate %462, %454, %466 in 0 : vector<8x128xf32>, vector<8x128xf32>, vector<8x128xf32> -> vector<24x128xf32>
    %cst_262 = arith.constant dense<0.000000e+00> : vector<8x128xf32>
    %468 = tpu.matmul %456, %467, %cst_262 {dimension_numbers = #tpu.dot_dimension_numbers<[1], [0], [0], [1], [0, 0, 1, 1], [], []>} : vector<8x24xf32>, vector<24x128xf32>, vector<8x128xf32> -> vector<8x128xf32>
    %469 = vector.broadcast %458 : vector<8x1xf32> to vector<8x128xf32>
    %470 = arith.addf %468, %469 : vector<8x128xf32>
    %c4_263 = arith.constant 4 : index
    %c0_264 = arith.constant 0 : index
    %c0_265 = arith.constant 0 : index
    %471 = vector.load %arg5[%c4_263, %c0_264, %c0_265] : memref<5x8x1xf32, #tpu.memory_space<vmem>>, vector<1x8x1xf32>
    %472 = vector.shape_cast %471 : vector<1x8x1xf32> to vector<8x1xf32>
    %c4_266 = arith.constant 4 : index
    %c0_267 = arith.constant 0 : index
    %c0_268 = arith.constant 0 : index
    %473 = vector.load %arg6[%c4_266, %c0_267, %c0_268] : memref<5x8x1xf32, #tpu.memory_space<vmem>>, vector<1x8x1xf32>
    %474 = vector.shape_cast %473 : vector<1x8x1xf32> to vector<8x1xf32>
    %c4_269 = arith.constant 4 : index
    %c0_270 = arith.constant 0 : index
    %475 = vector.load %arg12[%c4_269, %c0_270] : memref<5x128xf32, #tpu.memory_space<vmem>>, vector<1x128xf32>
    %476 = vector.broadcast %475 : vector<1x128xf32> to vector<8x128xf32>
    %477 = arith.mulf %470, %476 : vector<8x128xf32>
    %cst_271 = arith.constant dense<0.000000e+00> : vector<8xf32>
    %478 = vector.multi_reduction <add>, %477, %cst_271 [1] : vector<8x128xf32> to vector<8xf32>
    %479 = vector.shape_cast %478 : vector<8xf32> to vector<8x1xf32>
    %cst_272 = arith.constant 1.250000e-01 : f32
    %480 = vector.broadcast %cst_272 : f32 to vector<8x1xf32>
    %481 = arith.mulf %479, %480 : vector<8x1xf32>
    %482 = arith.mulf %477, %477 : vector<8x128xf32>
    %cst_273 = arith.constant dense<0.000000e+00> : vector<8xf32>
    %483 = vector.multi_reduction <add>, %482, %cst_273 [1] : vector<8x128xf32> to vector<8xf32>
    %484 = vector.shape_cast %483 : vector<8xf32> to vector<8x1xf32>
    %cst_274 = arith.constant 1.250000e-01 : f32
    %485 = vector.broadcast %cst_274 : f32 to vector<8x1xf32>
    %486 = arith.mulf %484, %485 : vector<8x1xf32>
    %487 = arith.mulf %481, %481 : vector<8x1xf32>
    %488 = arith.subf %486, %487 : vector<8x1xf32>
    %cst_275 = arith.constant 0.000000e+00 : f32
    %489 = vector.broadcast %cst_275 : f32 to vector<8x1xf32>
    %490 = arith.maximumf %488, %489 : vector<8x1xf32>
    %491 = vector.broadcast %481 : vector<8x1xf32> to vector<8x128xf32>
    %492 = arith.subf %470, %491 : vector<8x128xf32>
    %cst_276 = arith.constant 9.99999974E-6 : f32
    %493 = vector.broadcast %cst_276 : f32 to vector<8x1xf32>
    %494 = arith.addf %490, %493 : vector<8x1xf32>
    %495 = math.rsqrt %494 : vector<8x1xf32>
    %496 = vector.broadcast %495 : vector<8x1xf32> to vector<8x128xf32>
    %497 = arith.mulf %492, %496 : vector<8x128xf32>
    %498 = vector.broadcast %472 : vector<8x1xf32> to vector<8x128xf32>
    %499 = arith.mulf %497, %498 : vector<8x128xf32>
    %500 = vector.broadcast %474 : vector<8x1xf32> to vector<8x128xf32>
    %501 = arith.addf %499, %500 : vector<8x128xf32>
    %cst_277 = arith.constant 0.000000e+00 : f32
    %502 = vector.broadcast %cst_277 : f32 to vector<8x128xf32>
    %503 = arith.cmpf ogt, %501, %502 : vector<8x128xf32>
    %cst_278 = arith.constant 0.00999999977 : f32
    %504 = vector.broadcast %cst_278 : f32 to vector<8x128xf32>
    %505 = arith.mulf %504, %501 : vector<8x128xf32>
    %506 = arith.select %503, %501, %505 : vector<8x128xi1>, vector<8x128xf32>
    %c4_279 = arith.constant 4 : index
    %c0_280 = arith.constant 0 : index
    %c0_281 = arith.constant 0 : index
    %507 = vector.load %arg7[%c4_279, %c0_280, %c0_281] : memref<5x8x24xf32, #tpu.memory_space<vmem>>, vector<1x8x24xf32>
    %508 = vector.shape_cast %507 : vector<1x8x24xf32> to vector<8x24xf32>
    %c4_282 = arith.constant 4 : index
    %c0_283 = arith.constant 0 : index
    %c0_284 = arith.constant 0 : index
    %509 = vector.load %arg8[%c4_282, %c0_283, %c0_284] : memref<5x8x1xf32, #tpu.memory_space<vmem>>, vector<1x8x1xf32>
    %510 = vector.shape_cast %509 : vector<1x8x1xf32> to vector<8x1xf32>
    %c12_285 = arith.constant 12 : index
    %c0_286 = arith.constant 0 : index
    %511 = vector.load %arg11[%c12_285, %c0_286] : memref<15x128xf32, #tpu.memory_space<vmem>>, vector<1x128xf32>
    %c1_i32_287 = arith.constant 1 : i32
    %512 = tpu.dynamic_rotate %506 by %c1_i32_287 dim 1 : vector<8x128xf32>, i32 -> vector<8x128xf32>
    %513 = vector.broadcast %511 : vector<1x128xf32> to vector<8x128xf32>
    %514 = arith.mulf %512, %513 : vector<8x128xf32>
    %c14_288 = arith.constant 14 : index
    %c0_289 = arith.constant 0 : index
    %515 = vector.load %arg11[%c14_288, %c0_289] : memref<15x128xf32, #tpu.memory_space<vmem>>, vector<1x128xf32>
    %c127_i32_290 = arith.constant 127 : i32
    %516 = tpu.dynamic_rotate %506 by %c127_i32_290 dim 1 : vector<8x128xf32>, i32 -> vector<8x128xf32>
    %517 = vector.broadcast %515 : vector<1x128xf32> to vector<8x128xf32>
    %518 = arith.mulf %516, %517 : vector<8x128xf32>
    %519 = tpu.concatenate %514, %506, %518 in 0 : vector<8x128xf32>, vector<8x128xf32>, vector<8x128xf32> -> vector<24x128xf32>
    %cst_291 = arith.constant dense<0.000000e+00> : vector<8x128xf32>
    %520 = tpu.matmul %508, %519, %cst_291 {dimension_numbers = #tpu.dot_dimension_numbers<[1], [0], [0], [1], [0, 0, 1, 1], [], []>} : vector<8x24xf32>, vector<24x128xf32>, vector<8x128xf32> -> vector<8x128xf32>
    %521 = vector.broadcast %510 : vector<8x1xf32> to vector<8x128xf32>
    %522 = arith.addf %520, %521 : vector<8x128xf32>
    %c4_292 = arith.constant 4 : index
    %c0_293 = arith.constant 0 : index
    %c0_294 = arith.constant 0 : index
    %523 = vector.load %arg9[%c4_292, %c0_293, %c0_294] : memref<5x8x1xf32, #tpu.memory_space<vmem>>, vector<1x8x1xf32>
    %524 = vector.shape_cast %523 : vector<1x8x1xf32> to vector<8x1xf32>
    %c4_295 = arith.constant 4 : index
    %c0_296 = arith.constant 0 : index
    %c0_297 = arith.constant 0 : index
    %525 = vector.load %arg10[%c4_295, %c0_296, %c0_297] : memref<5x8x1xf32, #tpu.memory_space<vmem>>, vector<1x8x1xf32>
    %526 = vector.shape_cast %525 : vector<1x8x1xf32> to vector<8x1xf32>
    %c4_298 = arith.constant 4 : index
    %c0_299 = arith.constant 0 : index
    %527 = vector.load %arg12[%c4_298, %c0_299] : memref<5x128xf32, #tpu.memory_space<vmem>>, vector<1x128xf32>
    %528 = vector.broadcast %527 : vector<1x128xf32> to vector<8x128xf32>
    %529 = arith.mulf %522, %528 : vector<8x128xf32>
    %cst_300 = arith.constant dense<0.000000e+00> : vector<8xf32>
    %530 = vector.multi_reduction <add>, %529, %cst_300 [1] : vector<8x128xf32> to vector<8xf32>
    %531 = vector.shape_cast %530 : vector<8xf32> to vector<8x1xf32>
    %cst_301 = arith.constant 1.250000e-01 : f32
    %532 = vector.broadcast %cst_301 : f32 to vector<8x1xf32>
    %533 = arith.mulf %531, %532 : vector<8x1xf32>
    %534 = arith.mulf %529, %529 : vector<8x128xf32>
    %cst_302 = arith.constant dense<0.000000e+00> : vector<8xf32>
    %535 = vector.multi_reduction <add>, %534, %cst_302 [1] : vector<8x128xf32> to vector<8xf32>
    %536 = vector.shape_cast %535 : vector<8xf32> to vector<8x1xf32>
    %cst_303 = arith.constant 1.250000e-01 : f32
    %537 = vector.broadcast %cst_303 : f32 to vector<8x1xf32>
    %538 = arith.mulf %536, %537 : vector<8x1xf32>
    %539 = arith.mulf %533, %533 : vector<8x1xf32>
    %540 = arith.subf %538, %539 : vector<8x1xf32>
    %cst_304 = arith.constant 0.000000e+00 : f32
    %541 = vector.broadcast %cst_304 : f32 to vector<8x1xf32>
    %542 = arith.maximumf %540, %541 : vector<8x1xf32>
    %543 = vector.broadcast %533 : vector<8x1xf32> to vector<8x128xf32>
    %544 = arith.subf %522, %543 : vector<8x128xf32>
    %cst_305 = arith.constant 9.99999974E-6 : f32
    %545 = vector.broadcast %cst_305 : f32 to vector<8x1xf32>
    %546 = arith.addf %542, %545 : vector<8x1xf32>
    %547 = math.rsqrt %546 : vector<8x1xf32>
    %548 = vector.broadcast %547 : vector<8x1xf32> to vector<8x128xf32>
    %549 = arith.mulf %544, %548 : vector<8x128xf32>
    %550 = vector.broadcast %524 : vector<8x1xf32> to vector<8x128xf32>
    %551 = arith.mulf %549, %550 : vector<8x128xf32>
    %552 = vector.broadcast %526 : vector<8x1xf32> to vector<8x128xf32>
    %553 = arith.addf %551, %552 : vector<8x128xf32>
    %554 = arith.addf %553, %454 : vector<8x128xf32>
    %cst_306 = arith.constant 0.000000e+00 : f32
    %555 = vector.broadcast %cst_306 : f32 to vector<8x128xf32>
    %556 = arith.cmpf ogt, %554, %555 : vector<8x128xf32>
    %cst_307 = arith.constant 0.00999999977 : f32
    %557 = vector.broadcast %cst_307 : f32 to vector<8x128xf32>
    %558 = arith.mulf %557, %554 : vector<8x128xf32>
    %559 = arith.select %556, %554, %558 : vector<8x128xi1>, vector<8x128xf32>
    %c127_i32_308 = arith.constant 127 : i32
    %560 = tpu.dynamic_rotate %559 by %c127_i32_308 dim 1 : vector<8x128xf32>, i32 -> vector<8x128xf32>
    %561 = arith.maximumf %559, %560 : vector<8x128xf32>
    %c4_309 = arith.constant 4 : index
    %c0_310 = arith.constant 0 : index
    %c0_311 = arith.constant 0 : index
    %562 = vector.load %arg13[%c4_309, %c0_310, %c0_311] : memref<5x128x128xf32, #tpu.memory_space<vmem>>, vector<1x128x128xf32>
    %563 = vector.shape_cast %562 : vector<1x128x128xf32> to vector<128x128xf32>
    %cst_312 = arith.constant dense<0.000000e+00> : vector<8x128xf32>
    %564 = tpu.matmul %561, %563, %cst_312 {dimension_numbers = #tpu.dot_dimension_numbers<[1], [0], [0], [1], [0, 0, 1, 1], [], []>} : vector<8x128xf32>, vector<128x128xf32>, vector<8x128xf32> -> vector<8x128xf32>
    %c0_313 = arith.constant 0 : index
    %c0_314 = arith.constant 0 : index
    %565 = vector.load %arg14[%c0_313, %c0_314] : memref<128x4xf32, #tpu.memory_space<vmem>>, vector<128x4xf32>
    %cst_315 = arith.constant dense<0.000000e+00> : vector<8x4xf32>
    %566 = tpu.matmul %564, %565, %cst_315 {dimension_numbers = #tpu.dot_dimension_numbers<[1], [0], [0], [1], [0, 0, 1, 1], [], []>} : vector<8x128xf32>, vector<128x4xf32>, vector<8x4xf32> -> vector<8x4xf32>
    %567 = vector.extract_strided_slice %566 {offsets = [0, 0], sizes = [8, 2], strides = [1, 1]} : vector<8x4xf32> to vector<8x2xf32>
    %568 = vector.extract_strided_slice %566 {offsets = [0, 2], sizes = [8, 2], strides = [1, 1]} : vector<8x4xf32> to vector<8x2xf32>
    %569 = tpu.concatenate %567, %568 in 0 : vector<8x2xf32>, vector<8x2xf32> -> vector<16x2xf32>
    %c0_316 = arith.constant 0 : index
    %c0_317 = arith.constant 0 : index
    %570 = vector.load %arg15[%c0_316, %c0_317] : memref<8x16xf32, #tpu.memory_space<vmem>>, vector<8x16xf32>
    %cst_318 = arith.constant dense<0.000000e+00> : vector<8x2xf32>
    %571 = tpu.matmul %570, %569, %cst_318 {dimension_numbers = #tpu.dot_dimension_numbers<[1], [0], [0], [1], [0, 0, 1, 1], [], []>} : vector<8x16xf32>, vector<16x2xf32>, vector<8x2xf32> -> vector<8x2xf32>
    %c0_319 = arith.constant 0 : index
    %c0_320 = arith.constant 0 : index
    %572 = vector.load %arg16[%c0_319, %c0_320] : memref<8x1xf32, #tpu.memory_space<vmem>>, vector<8x1xf32>
    %573 = vector.broadcast %572 : vector<8x1xf32> to vector<8x2xf32>
    %574 = arith.addf %571, %573 : vector<8x2xf32>
    %c0_321 = arith.constant 0 : index
    %c0_322 = arith.constant 0 : index
    %575 = vector.load %arg17[%c0_321, %c0_322] : memref<8x2xf32, #tpu.memory_space<vmem>>, vector<8x2xf32>
    tpu.vector_store %arg17[%c0_321, %c0_322], %574 {strides = array<i32>} : memref<8x2xf32, #tpu.memory_space<vmem>>, vector<8x2xf32>,
    return
  }
}

</mosaic_0001>

<bundles_post_ra>
// kernel: conv_encoder_forward.1
= control target key start
LH: loop header
LB: loop body
LE: loop exit
PB: predicated region body
PF: predicated region fallthrough
CT: control target
= control target key end

     0   :  { %s3369_s0 = inlined_call_operand.vmem [shape: f32[8,128], index: 0, kind: input, shape index: {}]   ;;  %s3370_s1 = inlined_call_operand.vmem [shape: f32[8,24], index: 1, kind: input, shape index: {}]   ;;  %s3371_s2 = inlined_call_operand.vmem [shape: f32[8,1], index: 2, kind: input, shape index: {}]   ;;  %s3372_s3 = inlined_call_operand.vmem [shape: f32[5,8,24], index: 3, kind: input, shape index: {}]   ;;  %s3373_s4 = inlined_call_operand.vmem [shape: f32[5,8,1], index: 4, kind: input, shape index: {}]   ;;  %s3374_s5 = inlined_call_operand.vmem [shape: f32[5,8,1], index: 5, kind: input, shape index: {}]   ;;  %s3375_s6 = inlined_call_operand.vmem [shape: f32[5,8,1], index: 6, kind: input, shape index: {}]   ;;  %s3376_s7 = inlined_call_operand.vmem [shape: f32[5,8,24], index: 7, kind: input, shape index: {}]   ;;  %s3377_s8 = inlined_call_operand.vmem [shape: f32[5,8,1], index: 8, kind: input, shape index: {}]   ;;  %s3378_s9 = inlined_call_operand.vmem [shape: f32[5,8,1], index: 9, kind: input, shape index: {}]   ;;  %s3379_s10 = inlined_call_operand.vmem [shape: f32[5,8,1], index: 10, kind: input, shape index: {}]   ;;  %s3380_s11 = inlined_call_operand.vmem [shape: f32[15,128], index: 11, kind: input, shape index: {}]   ;;  %s3381_s12 = inlined_call_operand.vmem [shape: f32[5,128], index: 12, kind: input, shape index: {}]   ;;  %s3382_s13 = inlined_call_operand.hbm [shape: f32[5,128,128], index: 13, kind: input, shape index: {}]   ;;  %s3383_s14 = inlined_call_operand.vmem [shape: f32[128,4], index: 14, kind: input, shape index: {}]   ;;  %s3384_s15 = inlined_call_operand.vmem [shape: f32[8,16], index: 15, kind: input, shape index: {}]   ;;  %s3385_s16 = inlined_call_operand.vmem [shape: f32[8,1], index: 16, kind: input, shape index: {}]   ;;  %s3386_s17 = inlined_call_operand.vmem [shape: f32[8,2], index: 17, kind: output, shape index: {}]  }
   0x1   :  { %3387 = sst [smem:[#allocation5_spill]] %s3369_s0 }
   0x2   :  { %3388 = sst [smem:[#allocation6_spill]] %s3370_s1 }
   0x3   :  { %22 = vsyncpa [#allocation3], 0  ;;  %s2837_s24 = smov [#allocation2]   ;;  %s2813_s28 = scalar_lea.hbm %s3382_s13, 10240 }
   0x4   :  { %s54_s25 = sshll.u32 %s2837_s24, 4  ;;  %p2814_p0 = scmp.ne.s32.totalorder %s3382_s13, %s2813_s28  ;;  %s55_s25 = int_to_ptr.vmem [resolvable:$true] %s54_s25 }
   0x5   :  { %p2817_p1 = scmp.lt.u32.totalorder %s2813_s28, %s3382_s13 }
   0x7   :  { %p2819_p2 = pnand %p2817_p1, %p2814_p0 }
   0x9   :  { %2822 = shalt.err (!%p2819_p2)
}
   0xa   :  { %s2823_s19 = scalar_lea.vmem %s55_s25, 10240  ;;  %p2828_p4 = scmp.lt.s32.totalorder %s55_s25, %s55_s25 }
   0xb   :  { %p2824_p3 = scmp.ne.s32.totalorder %s55_s25, %s2823_s19  ;;  %p2829_p5 = scmp.lt.s32.totalorder %s2823_s19, %s2823_s19 }
   0xd   :  { %p2830_p6 = por %p2829_p5, %p2828_p4 }
   0xf   :  { %p2831_p7 = pnand %p2830_p6, %p2824_p3 }
  0x11   :  { %2834 = shalt.err (!%p2831_p7)
}
  0x12   :  { %s2838_s1 = smov 128   ;;  %s2839_s20 = smov 8  }
  0x13   :  { %60 = dma.hbm_to_vmem [thread:$0]  %s3382_s13, 10240, %s55_s25, [#allocation3], %s2838_s1, %s2838_s1, %s2839_s20  }
  0x14   :  { %2835 = dma.done.wait [#allocation3], 10240  }
  0x15   :  { %2836 = vsyncadd [#allocation3], 4294957056  ;;  %v2840_v0 = vmov 0.0|0.0   ;;  %vm2841_vm0 = vmmov 0   ;;  %v2842_v1 = vmov 0.0   ;;  %v2843_v2 = vmov 0  }
  0x16   :  { %2601 = vmatprep.subr.bf16.mxu0 %v2840_v0  ;;  %2604 = vmatprep.subr.bf16.mxu1 %v2840_v0  ;;  %s3389_s24 = sld [smem:[#allocation5_spill]]  ;;  %s2844_s25 = smov 1   ;;  %v72_v4 = vld [vmem:[%s3371_s2] sm:$0xff]  ;;  %vm94_vm1 = vcmask 195584   ;;  %vm1996_vm12 = vcmask 130048   ;;  %vm2070_vm13 = vcmask 15360  }
  0x17   :  { %2291 = vmatprep.mubr.msk.f32.mxu0 %vm2841_vm0, %v2842_v1  ;;  %2300 = vmatprep.mubr.msk.f32.mxu1 %vm2841_vm0, %v2842_v1  ;;  %s2845_s28 = smov 127   ;;  %v2966_v5 = vld [vmem:[%s3380_s11] ss:$0 sm:$0xff]  ;;  %v2972_v8 = vld [vmem:[%s3380_s11 + $0x2] ss:$0 sm:$0xff]  ;;  %s3390_s1 = sld [smem:[#allocation6_spill]] }
  0x18   :  { %2791 = vset.pattern.permute.xlu1 %v2843_v2  ;;  %2792 = vset.pattern.permute.xlu0 %v2843_v2  ;;  %v169_v17 = vld [vmem:[%s3373_s4] sm:$0xff]  ;;  %s2846_s18 = smov 126  }
  0x19   :  { %91 = vperm.xlu1 %2791, %v72_v4   ;;  %v168_v23 = vld [vmem:[%s3372_s3] sm:$0xff] }
  0x1a   :  { %v2081_v26 = vld [vmem:[%s3381_s12] ss:$0 sm:$0xff] }
  0x1b   :  { %v255_v31 = vld [vmem:[%s3375_s6] sm:$0xff] }
  0x1c   :  { %v70_v3 = vld [vmem:[%s3389_s24] sm:$0xff] }
  0x1d   :  { %74 = vrot.lane.b32.xlu0 %v70_v3, %s2844_s25  ;;  %v71_v12 = vld [vmem:[%s3390_s1] sm:$0xff] }
  0x1e   :  { %v254_v32 = vld [vmem:[%s3374_s5] sm:$0xff] }
  0x1f   :  { %v292_v50 = vld [vmem:[%s3377_s8] sm:$0xff] }
  0x20   :  { %v291_v56 = vld [vmem:[%s3376_s7] sm:$0xff] }
  0x21   :  { %82 = vrot.lane.b32.xlu0 %v70_v3, %s2845_s28  ;;  %v377_v63 = vld [vmem:[%s3378_s9] sm:$0xff] }
  0x22   :  { %v378_v2 = vld [vmem:[%s3379_s10] sm:$0xff] }
  0x23   :  { %v413_v4 = vld [vmem:[#allocation2] sm:$0xff] }
  0x8f   :  { %v75_v6 = vpop.permute.xlu0 %74 }
  0x90   :  { %v80_v7 = vmul.f32 %v2966_v5, %v75_v6  ;;  %v415_v6 = vld [vmem:[#allocation2 + $0x10] sm:$0xff] }
  0x92   :  { %v2602_v9 = vpack.c.bf16 %v70_v3, %v80_v7  ;;  %v2084_v3 = vld [vmem:[%s3373_s4 + $0x8] sm:$0xff] }
  0x93   :  { %v83_v10 = vpop.permute.xlu0 %82 }
  0x94   :  { %2603 = vmatpush3.bf16.msra.mxu0 %v2602_v9  ;;  %v88_v11 = vmul.f32 %v2972_v8, %v83_v10  ;;  %v417_v10 = vld [vmem:[#allocation2 + $0x20] sm:$0xff] }
  0x95   :  { %2289 = vmatprep.subr.mxu0 %v2842_v1 }
  0x98   :  { %2290 = vmatpush3.msra.mxu0 %v88_v11  ;;  %v92_v13 = vpop.permute.xlu1 %91  ;;  %v418_v11 = vld [vmem:[#allocation2 + $0x28] sm:$0xff] }
  0x99   :  { %2292 = vmatmul.mubr.msk.f32.vlgmr.msra.gmra.mrb[0].mxu0 %vm94_vm1, %v71_v12  ;;  %2607 = vmatprep.subr.bf16.mxu0 %v2840_v0  ;;  %v2617_v12 = vpack.c.bf16 %v418_v11, %v417_v10 }
  0x9a   :  { %2309 = vmatprep.mubr.msk.f32.mxu0 %vm2841_vm0, %v2842_v1 }
 0x16c   :  { %v164_v14 = vpop.f32.mrb[0].mxu0 }
 0x16d   :  { %v2983_v15 = vadd.f32 %v164_v14, %v92_v13  ;;  %v2293_v16 = vpop.f32.mrb[1].mxu0  ;;  %v419_v13 = vld [vmem:[#allocation2 + $0x30] sm:$0xff]  ;;  %v420_v14 = vld [vmem:[#allocation2 + $0x38] sm:$0xff] }
 0x16e   :  { %v2620_v16 = vpack.c.bf16 %v420_v14, %v419_v13 }
 0x16f   :  { %173 = vrot.lane.b32.xlu0 %v2983_v15, %s2845_s28  ;;  %170 = vrot.lane.b32.xlu1 %v2983_v15, %s2844_s25 }
 0x173   :  { %178 = vperm.xlu1 %2791, %v169_v17   ;;  %v421_v17 = vld [vmem:[#allocation2 + $0x40] sm:$0xff] }
 0x1e1   :  { %v171_v18 = vpop.permute.xlu1 %170  ;;  %v174_v21 = vpop.permute.xlu0 %173 }
 0x1e2   :  { %v172_v19 = vmul.f32 %v2966_v5, %v171_v18  ;;  %v175_v22 = vmul.f32 %v2972_v8, %v174_v21  ;;  %v422_v18 = vld [vmem:[#allocation2 + $0x48] sm:$0xff]  ;;  %v424_v21 = vld [vmem:[#allocation2 + $0x58] sm:$0xff] }
 0x1e4   :  { %v2605_v20 = vpack.c.bf16 %v2983_v15, %v172_v19  ;;  %v2623_v19 = vpack.c.bf16 %v422_v18, %v421_v17 }
 0x1e6   :  { %2606 = vmatpush3.bf16.msra.mxu1 %v2605_v20  ;;  %v423_v20 = vld [vmem:[#allocation2 + $0x50] sm:$0xff] }
 0x1e7   :  { %2298 = vmatprep.subr.mxu1 %v2842_v1 }
 0x1ea   :  { %2299 = vmatpush3.msra.mxu1 %v175_v22  ;;  %v2626_v22 = vpack.c.bf16 %v424_v21, %v423_v20 }
 0x1eb   :  { %2301 = vmatmul.mubr.msk.f32.vlgmr.msra.gmra.mrb[0].mxu1 %vm94_vm1, %v168_v23  ;;  %2610 = vmatprep.subr.bf16.mxu1 %v2840_v0  ;;  %v425_v23 = vld [vmem:[#allocation2 + $0x60] sm:$0xff] }
 0x1ec   :  { %2344 = vmatprep.mubr.msk.f32.mxu1 %vm2841_vm0, %v2842_v1 }
 0x1f2   :  { %v179_v24 = vpop.permute.xlu1 %178 }
 0x2be   :  { %v250_v25 = vpop.f32.mrb[0].mxu1 }
 0x2bf   :  { %v251_v27 = vadd.f32 %v250_v25, %v179_v24  ;;  %v2302_v28 = vpop.f32.mrb[1].mxu1  ;;  %v426_v24 = vld [vmem:[#allocation2 + $0x68] sm:$0xff] }
 0x2c0   :  { %v2629_v25 = vpack.c.bf16 %v426_v24, %v425_v23  ;;  %v2092_v23 = vld [vmem:[%s3377_s8 + $0x8] sm:$0xff] }
 0x2c1   :  { %v261_v29 = vmul.f32 %v2081_v26, %v251_v27 }
 0x2c3   :  { %262 = vadd.xlane.f32.xlu0 %v261_v29  ;;  %v265_v30 = vmul.f32 %v261_v29, %v261_v29 }
 0x2c5   :  { %266 = vadd.xlane.f32.xlu1 %v265_v30 }
 0x2d6   :  { %284 = vperm.xlu1 %2791, %v255_v31  }
 0x2d9   :  { %278 = vperm.xlu0 %2792, %v254_v32  }
 0x350   :  { %v263_v33 = vpop.xlane.xlu0 %262 }
 0x351   :  { %v264_v34 = vmul.f32 0.0078125, %v263_v33 }
 0x352   :  { %v267_v35 = vpop.xlane.xlu1 %266 }
 0x353   :  { %v269_v36 = vmul.f32 %v264_v34, %v264_v34  ;;  %v268_v37 = vmul.f32 0.0078125, %v267_v35  ;;  %v272_v41 = vsub.f32 %v251_v27, %v264_v34  ;;  %v428_v27 = vld [vmem:[#allocation2 + $0x78] sm:$0xff] }
 0x355   :  { %v270_v38 = vsub.f32 %v268_v37, %v269_v36 }
 0x356   :  { %v285_v46 = vpop.permute.xlu1 %284 }
 0x357   :  { %v271_v39 = vmax.f32 %v270_v38, 0.0 }
 0x358   :  { %v279_v43 = vpop.permute.xlu0 %278 }
 0x359   :  { %v273_v40 = vadd.f32 1e-05, %v271_v39 }
 0x35b   :  { %2793 = vrsqrt.f32 %v273_v40 }
 0x365   :  { %v2794_v42 = vpop.eup %2793 }
 0x366   :  { %v275_v44 = vmul.f32 %v2794_v42, %v272_v41 }
 0x368   :  { %v281_v45 = vmul.f32 %v279_v43, %v275_v44 }
 0x36a   :  { %v287_v47 = vadd.f32 %v285_v46, %v281_v45 }
 0x36c   :  { %vm288_vm2 = vcmp.gt.f32.partialorder %v287_v47, 0.0  ;;  %v289_v48 = vmul.f32 0.01, %v287_v47 }
 0x36e   :  { %v290_v49 = vsel %vm288_vm2, %v287_v47, %v289_v48 }
 0x36f   :  { %293 = vrot.lane.b32.xlu1 %v290_v49, %s2844_s25 }
 0x373   :  { %296 = vrot.lane.b32.xlu1 %v290_v49, %s2845_s28 }
 0x377   :  { %301 = vperm.xlu1 %2791, %v292_v50  }
 0x3e1   :  { %v294_v51 = vpop.permute.xlu1 %293 }
 0x3e2   :  { %v295_v52 = vmul.f32 %v2966_v5, %v294_v51  ;;  %v414_v5 = vld [vmem:[#allocation2 + $0x8] sm:$0xff] }
 0x3e3   :  { %v2611_v7 = vpack.c.bf16 %v414_v5, %v413_v4  ;;  %v2088_v4 = vld [vmem:[%s3374_s5 + $0x8] sm:$0xff] }
 0x3e4   :  { %v2608_v53 = vpack.c.bf16 %v290_v49, %v295_v52 }
 0x3e5   :  { %v297_v54 = vpop.permute.xlu1 %296  ;;  %2612 = vmatpush3.bf16.msra.mxu1 %v2611_v7 }
 0x3e6   :  { %2609 = vmatpush3.bf16.msra.mxu0 %v2608_v53  ;;  %v298_v55 = vmul.f32 %v2972_v8, %v297_v54  ;;  %v416_v8 = vld [vmem:[#allocation2 + $0x18] sm:$0xff]  ;;  %2613 = vmatprep.subr.bf16.mxu1 %v2840_v0  ;;  %v2086_v54 = vld [vmem:[%s3380_s11 + $0x5] ss:$0 sm:$0xff] }
 0x3e7   :  { %2307 = vmatprep.subr.mxu0 %v2842_v1  ;;  %v2614_v9 = vpack.c.bf16 %v416_v8, %v415_v6 }
 0x3e9   :  { %2615 = vmatpush3.bf16.msra.mxu1 %v2614_v9 }
 0x3ea   :  { %2308 = vmatpush3.msra.mxu0 %v298_v55  ;;  %2616 = vmatprep.subr.bf16.mxu1 %v2840_v0 }
 0x3eb   :  { %2310 = vmatmul.mubr.msk.f32.vlgmr.msra.gmra.mrb[2].mxu0 %vm94_vm1, %v291_v56  ;;  %2634 = vmatprep.subr.bf16.mxu0 %v2840_v0 }
 0x3ec   :  { %2353 = vmatprep.mubr.msk.f32.mxu0 %vm2841_vm0, %v2842_v1 }
 0x3ed   :  { %2618 = vmatpush3.bf16.msra.mxu1 %v2617_v12 }
 0x3ee   :  { %2619 = vmatprep.subr.bf16.mxu1 %v2840_v0 }
 0x3f1   :  { %2621 = vmatpush3.bf16.msra.mxu1 %v2620_v16 }
 0x3f2   :  { %2622 = vmatprep.subr.bf16.mxu1 %v2840_v0 }
 0x3f5   :  { %2624 = vmatpush3.bf16.msra.mxu1 %v2623_v19 }
 0x3f6   :  { %v302_v57 = vpop.permute.xlu1 %301  ;;  %2625 = vmatprep.subr.bf16.mxu1 %v2840_v0 }
 0x3f9   :  { %2627 = vmatpush3.bf16.msra.mxu1 %v2626_v22 }
 0x3fa   :  { %2628 = vmatprep.subr.bf16.mxu1 %v2840_v0 }
 0x3fd   :  { %2630 = vmatpush3.bf16.msra.mxu1 %v2629_v25 }
 0x3fe   :  { %2631 = vmatprep.subr.bf16.mxu1 %v2840_v0 }
 0x4be   :  { %v373_v58 = vpop.f32.mrb[2].mxu0 }
 0x4bf   :  { %v3027_v59 = vadd.f32 %v373_v58, %v302_v57  ;;  %v2311_v60 = vpop.f32.mrb[3].mxu0  ;;  %v2083_v57 = vld [vmem:[%s3372_s3 + $0x8] sm:$0xff] }
 0x4c0   :  { %v2090_v60 = vld [vmem:[%s3381_s12 + $0x1] ss:$0 sm:$0xff] }
 0x4c1   :  { %v379_v61 = vmul.f32 %v2081_v26, %v3027_v59  ;;  %v427_v26 = vld [vmem:[#allocation2 + $0x70] sm:$0xff] }
 0x4c2   :  { %v2632_v28 = vpack.c.bf16 %v428_v27, %v427_v26 }
 0x4c3   :  { %380 = vadd.xlane.f32.xlu1 %v379_v61  ;;  %v383_v62 = vmul.f32 %v379_v61, %v379_v61 }
 0x4c4   :  { %2633 = vmatpush3.bf16.msra.mxu1 %v2632_v28 }
 0x4c5   :  { %384 = vadd.xlane.f32.xlu0 %v383_v62  ;;  %2664 = vmatprep.subr.bf16.mxu1 %v2840_v0 }
 0x4d4   :  { %396 = vperm.xlu1 %2791, %v377_v63  }
 0x4db   :  { %402 = vperm.xlu0 %2792, %v378_v2  }
 0x4df   :  { %521 = vperm.xlu0 %2792, %v2084_v3   ;;  %v2089_v3 = vld [vmem:[%s3375_s6 + $0x8] sm:$0xff] }
 0x550   :  { %v381_v29 = vpop.xlane.xlu1 %380 }
 0x551   :  { %v382_v30 = vmul.f32 0.0078125, %v381_v29  ;;  %v2091_v29 = vld [vmem:[%s3376_s7 + $0x8] sm:$0xff] }
 0x552   :  { %v385_v31 = vpop.xlane.xlu0 %384 }
 0x553   :  { %v387_v32 = vmul.f32 %v382_v30, %v382_v30  ;;  %v386_v33 = vmul.f32 0.0078125, %v385_v31  ;;  %v390_v37 = vsub.f32 %v3027_v59, %v382_v30 }
 0x554   :  { %v397_v40 = vpop.permute.xlu1 %396 }
 0x555   :  { %v388_v34 = vsub.f32 %v386_v33, %v387_v32 }
 0x557   :  { %v389_v35 = vmax.f32 %v388_v34, 0.0 }
 0x559   :  { %v391_v36 = vadd.f32 1e-05, %v389_v35 }
 0x55a   :  { %v403_v42 = vpop.permute.xlu0 %402 }
 0x55b   :  { %2795 = vrsqrt.f32 %v391_v36  ;;  %v2095_v36 = vld [vmem:[%s3379_s10 + $0x8] sm:$0xff] }
 0x55e   :  { %v522_v58 = vpop.permute.xlu0 %521 }
 0x565   :  { %v2796_v38 = vpop.eup %2795 }
 0x566   :  { %v393_v39 = vmul.f32 %v2796_v38, %v390_v37  ;;  %v2094_v37 = vld [vmem:[%s3378_s9 + $0x8] sm:$0xff]  ;;  %v763_v38 = vld [vmem:[#allocation2 + $0x80] sm:$0xff] }
 0x568   :  { %v399_v41 = vmul.f32 %v397_v40, %v393_v39  ;;  %v764_v39 = vld [vmem:[#allocation2 + $0x88] sm:$0xff]  ;;  %v765_v40 = vld [vmem:[#allocation2 + $0x90] sm:$0xff] }
 0x56a   :  { %v405_v43 = vadd.f32 %v403_v42, %v399_v41  ;;  %v2641_v41 = vpack.c.bf16 %v764_v39, %v763_v38  ;;  %v766_v42 = vld [vmem:[#allocation2 + $0x98] sm:$0xff]  ;;  %v2102_v38 = vld [vmem:[%s3375_s6 + $0x10] sm:$0xff] }
 0x56b   :  { %v2101_v39 = vld [vmem:[%s3374_s5 + $0x10] sm:$0xff] }
 0x56c   :  { %v406_v44 = vadd.f32 %v405_v43, %v2983_v15  ;;  %v2085_v15 = vld [vmem:[%s3380_s11 + $0x3] ss:$0 sm:$0xff]  ;;  %v2644_v43 = vpack.c.bf16 %v766_v42, %v765_v40 }
 0x56e   :  { %vm407_vm3 = vcmp.gt.f32.partialorder %v406_v44, 0.0  ;;  %v408_v45 = vmul.f32 0.01, %v406_v44 }
 0x570   :  { %v409_v46 = vsel %vm407_vm3, %v406_v44, %v408_v45  ;;  %v767_v44 = vld [vmem:[#allocation2 + $0xa0] sm:$0xff]  ;;  %v768_v45 = vld [vmem:[#allocation2 + $0xa8] sm:$0xff] }
 0x571   :  { %410 = vrot.lane.b32.xlu1 %v409_v46, %s2845_s28 }
 0x5e3   :  { %v411_v47 = vpop.permute.xlu1 %410 }
 0x5e4   :  { %v412_v48 = vmax.f32 %v409_v46, %v411_v47  ;;  %v2647_v46 = vpack.c.bf16 %v768_v45, %v767_v44  ;;  %v769_v47 = vld [vmem:[#allocation2 + $0xb0] sm:$0xff] }
 0x5e6   :  { %2345 = vmatmul.mubr.f32.vlgmr.msra.gmra.mrb[2].mxu1 %v412_v48  ;;  %v770_v48 = vld [vmem:[#allocation2 + $0xb8] sm:$0xff] }
 0x5e7   :  { %2406 = vmatprep.mubr.msk.f32.mxu1 %vm2841_vm0, %v2842_v1 }
 0x6b9   :  { %v3052_v49 = vpop.f32.mrb[2].mxu1 }
 0x6ba   :  { %504 = vrot.lane.b32.xlu1 %v3052_v49, %s2844_s25  ;;  %v2346_v50 = vpop.f32.mrb[3].mxu1 }
 0x6bb   :  { %v2650_v50 = vpack.c.bf16 %v770_v48, %v769_v47 }
 0x6be   :  { %512 = vrot.lane.b32.xlu1 %v3052_v49, %s2845_s28 }
 0x72c   :  { %v505_v51 = vpop.permute.xlu1 %504 }
 0x72d   :  { %v510_v52 = vmul.f32 %v2085_v15, %v505_v51  ;;  %v772_v51 = vld [vmem:[#allocation2 + $0xc8] sm:$0xff] }
 0x72f   :  { %v2635_v53 = vpack.c.bf16 %v3052_v49, %v510_v52 }
 0x730   :  { %v513_v55 = vpop.permute.xlu1 %512 }
 0x731   :  { %2636 = vmatpush3.bf16.msra.mxu0 %v2635_v53  ;;  %v518_v56 = vmul.f32 %v2086_v54, %v513_v55  ;;  %v773_v53 = vld [vmem:[#allocation2 + $0xd0] sm:$0xff] }
 0x732   :  { %2351 = vmatprep.subr.mxu0 %v2842_v1 }
 0x735   :  { %2352 = vmatpush3.msra.mxu0 %v518_v56  ;;  %v775_v56 = vld [vmem:[#allocation2 + $0xe0] sm:$0xff] }
 0x736   :  { %2354 = vmatmul.mubr.msk.f32.vlgmr.msra.gmra.mrb[4].mxu0 %vm94_vm1, %v2083_v57  ;;  %2637 = vmatprep.subr.bf16.mxu0 %v2840_v0  ;;  %v776_v57 = vld [vmem:[#allocation2 + $0xe8] sm:$0xff] }
 0x737   :  { %2362 = vmatprep.mubr.msk.f32.mxu0 %vm2841_vm0, %v2842_v1 }
 0x809   :  { %v593_v59 = vpop.f32.mrb[4].mxu0 }
 0x80a   :  { %v594_v61 = vadd.f32 %v593_v59, %v522_v58  ;;  %v2355_v62 = vpop.f32.mrb[5].mxu0  ;;  %v2659_v58 = vpack.c.bf16 %v776_v57, %v775_v56  ;;  %v777_v59 = vld [vmem:[#allocation2 + $0xf0] sm:$0xff] }
 0x80b   :  { %v2105_v57 = vld [vmem:[%s3377_s8 + $0x10] sm:$0xff] }
 0x80c   :  { %v606_v63 = vmul.f32 %v2090_v60, %v594_v61 }
 0x80e   :  { %607 = vadd.xlane.f32.xlu1 %v606_v63  ;;  %v610_v2 = vmul.f32 %v606_v63, %v606_v63 }
 0x810   :  { %611 = vadd.xlane.f32.xlu0 %v610_v2 }
 0x81f   :  { %629 = vperm.xlu1 %2791, %v2089_v3  }
 0x826   :  { %623 = vperm.xlu0 %2792, %v2088_v4  }
 0x89b   :  { %v608_v5 = vpop.xlane.xlu1 %607 }
 0x89c   :  { %v609_v6 = vmul.f32 0.015625, %v608_v5 }
 0x89d   :  { %v612_v7 = vpop.xlane.xlu0 %611 }
 0x89e   :  { %v614_v8 = vmul.f32 %v609_v6, %v609_v6  ;;  %v613_v9 = vmul.f32 0.015625, %v612_v7  ;;  %v617_v13 = vsub.f32 %v594_v61, %v609_v6 }
 0x89f   :  { %v630_v19 = vpop.permute.xlu1 %629 }
 0x8a0   :  { %v615_v10 = vsub.f32 %v613_v9, %v614_v8 }
 0x8a2   :  { %v616_v11 = vmax.f32 %v615_v10, 0.0 }
 0x8a4   :  { %v618_v12 = vadd.f32 1e-05, %v616_v11 }
 0x8a5   :  { %v624_v17 = vpop.permute.xlu0 %623 }
 0x8a6   :  { %2797 = vrsqrt.f32 %v618_v12 }
 0x8b0   :  { %v2798_v14 = vpop.eup %2797 }
 0x8b1   :  { %v620_v16 = vmul.f32 %v2798_v14, %v617_v13 }
 0x8b3   :  { %v626_v18 = vmul.f32 %v624_v17, %v620_v16 }
 0x8b5   :  { %v632_v20 = vadd.f32 %v630_v19, %v626_v18 }
 0x8b7   :  { %vm633_vm4 = vcmp.gt.f32.partialorder %v632_v20, 0.0  ;;  %v634_v21 = vmul.f32 0.01, %v632_v20 }
 0x8b9   :  { %v635_v22 = vsel %vm633_vm4, %v632_v20, %v634_v21 }
 0x8ba   :  { %643 = vrot.lane.b32.xlu0 %v635_v22, %s2845_s28  ;;  %640 = vrot.lane.b32.xlu1 %v635_v22, %s2844_s25 }
 0x8be   :  { %648 = vperm.xlu1 %2791, %v2092_v23   ;;  %v2098_v23 = vld [vmem:[%s3380_s11 + $0x6] ss:$0 sm:$0xff] }
 0x92c   :  { %v641_v24 = vpop.permute.xlu1 %640  ;;  %v644_v27 = vpop.permute.xlu0 %643 }
 0x92d   :  { %v642_v25 = vmul.f32 %v2085_v15, %v641_v24  ;;  %v645_v28 = vmul.f32 %v2086_v54, %v644_v27  ;;  %v771_v15 = vld [vmem:[#allocation2 + $0xc0] sm:$0xff]  ;;  %v774_v54 = vld [vmem:[#allocation2 + $0xd8] sm:$0xff]  ;;  %v2099_v27 = vld [vmem:[%s3380_s11 + $0x8] ss:$0 sm:$0xff] }
 0x92e   :  { %v2653_v52 = vpack.c.bf16 %v772_v51, %v771_v15  ;;  %v2656_v55 = vpack.c.bf16 %v774_v54, %v773_v53 }
 0x92f   :  { %v2638_v26 = vpack.c.bf16 %v635_v22, %v642_v25  ;;  %v2097_v22 = vld [vmem:[%s3373_s4 + $0x10] sm:$0xff] }
 0x931   :  { %2639 = vmatpush3.bf16.msra.mxu0 %v2638_v26 }
 0x932   :  { %2360 = vmatprep.subr.mxu0 %v2842_v1 }
 0x935   :  { %2361 = vmatpush3.msra.mxu0 %v645_v28 }
 0x936   :  { %2363 = vmatmul.mubr.msk.f32.vlgmr.msra.gmra.mrb[6].mxu0 %vm94_vm1, %v2091_v29  ;;  %2640 = vmatprep.subr.bf16.mxu0 %v2840_v0 }
 0x937   :  { %2397 = vmatprep.mubr.msk.f32.mxu0 %vm2841_vm0, %v2842_v1  ;;  %2642 = vmatpush3.bf16.msra.mxu0 %v2641_v41 }
 0x938   :  { %2643 = vmatprep.subr.bf16.mxu0 %v2840_v0 }
 0x93b   :  { %2645 = vmatpush3.bf16.msra.mxu0 %v2644_v43 }
 0x93c   :  { %2646 = vmatprep.subr.bf16.mxu0 %v2840_v0 }
 0x93d   :  { %v649_v30 = vpop.permute.xlu1 %648 }
 0x93f   :  { %2648 = vmatpush3.bf16.msra.mxu0 %v2647_v46 }
 0x940   :  { %2649 = vmatprep.subr.bf16.mxu0 %v2840_v0 }
 0x943   :  { %2651 = vmatpush3.bf16.msra.mxu0 %v2650_v50 }
 0x944   :  { %2652 = vmatprep.subr.bf16.mxu0 %v2840_v0 }
 0x947   :  { %2654 = vmatpush3.bf16.msra.mxu0 %v2653_v52 }
 0x948   :  { %2655 = vmatprep.subr.bf16.mxu0 %v2840_v0 }
 0x94b   :  { %2657 = vmatpush3.bf16.msra.mxu0 %v2656_v55 }
 0x94c   :  { %2658 = vmatprep.subr.bf16.mxu0 %v2840_v0 }
 0x94f   :  { %2660 = vmatpush3.bf16.msra.mxu0 %v2659_v58 }
 0x950   :  { %2661 = vmatprep.subr.bf16.mxu0 %v2840_v0 }
 0xa09   :  { %v720_v31 = vpop.f32.mrb[6].mxu0 }
 0xa0a   :  { %v721_v32 = vadd.f32 %v720_v31, %v649_v30  ;;  %v2364_v33 = vpop.f32.mrb[7].mxu0  ;;  %v2096_v30 = vld [vmem:[%s3372_s3 + $0x10] sm:$0xff] }
 0xa0b   :  { %v2103_v33 = vld [vmem:[%s3381_s12 + $0x2] ss:$0 sm:$0xff] }
 0xa0c   :  { %v728_v34 = vmul.f32 %v2090_v60, %v721_v32  ;;  %v778_v60 = vld [vmem:[#allocation2 + $0xf8] sm:$0xff] }
 0xa0d   :  { %v2662_v61 = vpack.c.bf16 %v778_v60, %v777_v59 }
 0xa0e   :  { %729 = vadd.xlane.f32.xlu0 %v728_v34  ;;  %v732_v35 = vmul.f32 %v728_v34, %v728_v34 }
 0xa0f   :  { %2663 = vmatpush3.bf16.msra.mxu0 %v2662_v61 }
 0xa10   :  { %733 = vadd.xlane.f32.xlu1 %v732_v35  ;;  %2694 = vmatprep.subr.bf16.mxu0 %v2840_v0 }
 0xa21   :  { %751 = vperm.xlu1 %2791, %v2095_v36  }
 0xa24   :  { %745 = vperm.xlu0 %2792, %v2094_v37  }
 0xa9b   :  { %v730_v62 = vpop.xlane.xlu0 %729 }
 0xa9c   :  { %v731_v63 = vmul.f32 0.015625, %v730_v62 }
 0xa9d   :  { %v734_v2 = vpop.xlane.xlu1 %733 }
 0xa9e   :  { %v736_v3 = vmul.f32 %v731_v63, %v731_v63  ;;  %v735_v4 = vmul.f32 0.015625, %v734_v2  ;;  %v739_v8 = vsub.f32 %v721_v32, %v731_v63  ;;  %v2104_v63 = vld [vmem:[%s3376_s7 + $0x10] sm:$0xff] }
 0xaa0   :  { %v737_v5 = vsub.f32 %v735_v4, %v736_v3 }
 0xaa1   :  { %v752_v13 = vpop.permute.xlu1 %751 }
 0xaa2   :  { %v738_v6 = vmax.f32 %v737_v5, 0.0 }
 0xaa3   :  { %v746_v11 = vpop.permute.xlu0 %745 }
 0xaa4   :  { %v740_v7 = vadd.f32 1e-05, %v738_v6 }
 0xaa6   :  { %2799 = vrsqrt.f32 %v740_v7 }
 0xab0   :  { %v2800_v9 = vpop.eup %2799 }
 0xab1   :  { %v742_v10 = vmul.f32 %v2800_v9, %v739_v8  ;;  %v2108_v8 = vld [vmem:[%s3379_s10 + $0x10] sm:$0xff] }
 0xab2   :  { %v2107_v9 = vld [vmem:[%s3378_s9 + $0x10] sm:$0xff] }
 0xab3   :  { %v748_v12 = vmul.f32 %v746_v11, %v742_v10  ;;  %v1113_v10 = vld [vmem:[#allocation2 + $0x100] sm:$0xff]  ;;  %v1114_v11 = vld [vmem:[#allocation2 + $0x108] sm:$0xff] }
 0xab5   :  { %v754_v14 = vadd.f32 %v752_v13, %v748_v12  ;;  %v1115_v12 = vld [vmem:[#allocation2 + $0x110] sm:$0xff]  ;;  %v2671_v13 = vpack.c.bf16 %v1114_v11, %v1113_v10  ;;  %v2115_v10 = vld [vmem:[%s3375_s6 + $0x18] sm:$0xff] }
 0xab6   :  { %v2114_v11 = vld [vmem:[%s3374_s5 + $0x18] sm:$0xff] }
 0xab7   :  { %v755_v16 = vadd.f32 %v754_v14, %v3052_v49  ;;  %v1116_v14 = vld [vmem:[#allocation2 + $0x118] sm:$0xff] }
 0xab9   :  { %vm756_vm5 = vcmp.gt.f32.partialorder %v755_v16, 0.0  ;;  %v757_v17 = vmul.f32 0.01, %v755_v16 }
 0xabb   :  { %v758_v18 = vsel %vm756_vm5, %v755_v16, %v757_v17  ;;  %v2674_v16 = vpack.c.bf16 %v1116_v14, %v1115_v12  ;;  %v1117_v17 = vld [vmem:[#allocation2 + $0x120] sm:$0xff] }
 0xabc   :  { %759 = vrot.lane.b32.xlu0 %v758_v18, %s2845_s28 }
 0xb2e   :  { %v760_v19 = vpop.permute.xlu0 %759 }
 0xb2f   :  { %v761_v20 = vmax.f32 %v758_v18, %v760_v19  ;;  %v1118_v18 = vld [vmem:[#allocation2 + $0x128] sm:$0xff] }
 0xb30   :  { %v2677_v19 = vpack.c.bf16 %v1118_v18, %v1117_v17 }
 0xb31   :  { %2398 = vmatmul.mubr.f32.vlgmr.msra.gmra.mrb[8].mxu0 %v761_v20  ;;  %v1119_v20 = vld [vmem:[#allocation2 + $0x130] sm:$0xff] }
 0xb32   :  { %2459 = vmatprep.mubr.msk.f32.mxu0 %vm2841_vm0, %v2842_v1 }
 0xc04   :  { %v3113_v21 = vpop.f32.mrb[8].mxu0 }
 0xc05   :  { %862 = vrot.lane.b32.xlu0 %v3113_v21, %s2845_s28  ;;  %854 = vrot.lane.b32.xlu1 %v3113_v21, %s2844_s25  ;;  %v2399_v49 = vpop.f32.mrb[9].mxu0 }
 0xc06   :  { %v1120_v49 = vld [vmem:[#allocation2 + $0x138] sm:$0xff] }
 0xc09   :  { %871 = vperm.xlu1 %2791, %v2097_v22   ;;  %v2680_v22 = vpack.c.bf16 %v1120_v49, %v1119_v20 }
 0xc77   :  { %v855_v24 = vpop.permute.xlu1 %854  ;;  %v863_v28 = vpop.permute.xlu0 %862 }
 0xc78   :  { %v860_v25 = vmul.f32 %v2098_v23, %v855_v24  ;;  %v868_v29 = vmul.f32 %v2099_v27, %v863_v28  ;;  %v1122_v24 = vld [vmem:[#allocation2 + $0x148] sm:$0xff] }
 0xc7a   :  { %v2665_v26 = vpack.c.bf16 %v3113_v21, %v860_v25 }
 0xc7c   :  { %2666 = vmatpush3.bf16.msra.mxu1 %v2665_v26  ;;  %v1123_v26 = vld [vmem:[#allocation2 + $0x150] sm:$0xff] }
 0xc7d   :  { %2404 = vmatprep.subr.mxu1 %v2842_v1 }
 0xc80   :  { %2405 = vmatpush3.msra.mxu1 %v868_v29  ;;  %v1125_v29 = vld [vmem:[#allocation2 + $0x160] sm:$0xff] }
 0xc81   :  { %2407 = vmatmul.mubr.msk.f32.vlgmr.msra.gmra.mrb[4].mxu1 %vm94_vm1, %v2096_v30  ;;  %2667 = vmatprep.subr.bf16.mxu1 %v2840_v0  ;;  %v1126_v30 = vld [vmem:[#allocation2 + $0x168] sm:$0xff] }
 0xc82   :  { %2415 = vmatprep.mubr.msk.f32.mxu1 %vm2841_vm0, %v2842_v1 }
 0xc88   :  { %v872_v31 = vpop.permute.xlu1 %871 }
 0xd54   :  { %v943_v32 = vpop.f32.mrb[4].mxu1 }
 0xd55   :  { %v944_v34 = vadd.f32 %v943_v32, %v872_v31  ;;  %v2408_v35 = vpop.f32.mrb[5].mxu1  ;;  %v2689_v31 = vpack.c.bf16 %v1126_v30, %v1125_v29  ;;  %v1127_v32 = vld [vmem:[#allocation2 + $0x170] sm:$0xff]  ;;  %v2118_v30 = vld [vmem:[%s3377_s8 + $0x18] sm:$0xff] }
 0xd57   :  { %v956_v36 = vmul.f32 %v2103_v33, %v944_v34 }
 0xd59   :  { %957 = vadd.xlane.f32.xlu0 %v956_v36  ;;  %v960_v37 = vmul.f32 %v956_v36, %v956_v36 }
 0xd5b   :  { %961 = vadd.xlane.f32.xlu1 %v960_v37 }
 0xd6c   :  { %979 = vperm.xlu1 %2791, %v2102_v38  }
 0xd6f   :  { %973 = vperm.xlu0 %2792, %v2101_v39  }
 0xde6   :  { %v958_v40 = vpop.xlane.xlu0 %957 }
 0xde7   :  { %v959_v41 = vmul.f32 0.03125, %v958_v40 }
 0xde8   :  { %v962_v42 = vpop.xlane.xlu1 %961 }
 0xde9   :  { %v964_v43 = vmul.f32 %v959_v41, %v959_v41  ;;  %v963_v44 = vmul.f32 0.03125, %v962_v42  ;;  %v967_v48 = vsub.f32 %v944_v34, %v959_v41 }
 0xdeb   :  { %v965_v45 = vsub.f32 %v963_v44, %v964_v43 }
 0xdec   :  { %v980_v53 = vpop.permute.xlu1 %979 }
 0xded   :  { %v966_v46 = vmax.f32 %v965_v45, 0.0 }
 0xdee   :  { %v974_v51 = vpop.permute.xlu0 %973 }
 0xdef   :  { %v968_v47 = vadd.f32 1e-05, %v966_v46 }
 0xdf1   :  { %2801 = vrsqrt.f32 %v968_v47 }
 0xdfb   :  { %v2802_v50 = vpop.eup %2801 }
 0xdfc   :  { %v970_v15 = vmul.f32 %v2802_v50, %v967_v48 }
 0xdfe   :  { %v976_v52 = vmul.f32 %v974_v51, %v970_v15 }
 0xe00   :  { %v982_v54 = vadd.f32 %v980_v53, %v976_v52 }
 0xe02   :  { %vm983_vm6 = vcmp.gt.f32.partialorder %v982_v54, 0.0  ;;  %v984_v55 = vmul.f32 0.01, %v982_v54 }
 0xe04   :  { %v985_v56 = vsel %vm983_vm6, %v982_v54, %v984_v55 }
 0xe05   :  { %993 = vrot.lane.b32.xlu1 %v985_v56, %s2845_s28  ;;  %990 = vrot.lane.b32.xlu0 %v985_v56, %s2844_s25 }
 0xe09   :  { %998 = vperm.xlu0 %2792, %v2105_v57   ;;  %v2111_v57 = vld [vmem:[%s3380_s11 + $0x9] ss:$0 sm:$0xff] }
 0xe77   :  { %v991_v58 = vpop.permute.xlu0 %990  ;;  %v994_v61 = vpop.permute.xlu1 %993 }
 0xe78   :  { %v992_v59 = vmul.f32 %v2098_v23, %v991_v58  ;;  %v995_v62 = vmul.f32 %v2099_v27, %v994_v61  ;;  %v1121_v23 = vld [vmem:[#allocation2 + $0x140] sm:$0xff]  ;;  %v1124_v27 = vld [vmem:[#allocation2 + $0x158] sm:$0xff]  ;;  %v2112_v61 = vld [vmem:[%s3380_s11 + $0xb] ss:$0 sm:$0xff] }
 0xe79   :  { %v2683_v25 = vpack.c.bf16 %v1122_v24, %v1121_v23  ;;  %v2686_v28 = vpack.c.bf16 %v1124_v27, %v1123_v26 }
 0xe7a   :  { %v2668_v60 = vpack.c.bf16 %v985_v56, %v992_v59  ;;  %v2110_v56 = vld [vmem:[%s3373_s4 + $0x18] sm:$0xff] }
 0xe7c   :  { %2669 = vmatpush3.bf16.msra.mxu1 %v2668_v60 }
 0xe7d   :  { %2413 = vmatprep.subr.mxu1 %v2842_v1 }
 0xe80   :  { %2414 = vmatpush3.msra.mxu1 %v995_v62 }
 0xe81   :  { %2416 = vmatmul.mubr.msk.f32.vlgmr.msra.gmra.mrb[6].mxu1 %vm94_vm1, %v2104_v63  ;;  %2670 = vmatprep.subr.bf16.mxu1 %v2840_v0 }
 0xe82   :  { %2450 = vmatprep.mubr.msk.f32.mxu1 %vm2841_vm0, %v2842_v1  ;;  %2672 = vmatpush3.bf16.msra.mxu1 %v2671_v13 }
 0xe83   :  { %2673 = vmatprep.subr.bf16.mxu1 %v2840_v0 }
 0xe86   :  { %2675 = vmatpush3.bf16.msra.mxu1 %v2674_v16 }
 0xe87   :  { %2676 = vmatprep.subr.bf16.mxu1 %v2840_v0 }
 0xe88   :  { %v999_v2 = vpop.permute.xlu0 %998 }
 0xe8a   :  { %2678 = vmatpush3.bf16.msra.mxu1 %v2677_v19 }
 0xe8b   :  { %2679 = vmatprep.subr.bf16.mxu1 %v2840_v0 }
 0xe8e   :  { %2681 = vmatpush3.bf16.msra.mxu1 %v2680_v22 }
 0xe8f   :  { %2682 = vmatprep.subr.bf16.mxu1 %v2840_v0 }
 0xe92   :  { %2684 = vmatpush3.bf16.msra.mxu1 %v2683_v25 }
 0xe93   :  { %2685 = vmatprep.subr.bf16.mxu1 %v2840_v0 }
 0xe96   :  { %2687 = vmatpush3.bf16.msra.mxu1 %v2686_v28 }
 0xe97   :  { %2688 = vmatprep.subr.bf16.mxu1 %v2840_v0 }
 0xe9a   :  { %2690 = vmatpush3.bf16.msra.mxu1 %v2689_v31 }
 0xe9b   :  { %2691 = vmatprep.subr.bf16.mxu1 %v2840_v0 }
 0xf54   :  { %v1070_v3 = vpop.f32.mrb[6].mxu1 }
 0xf55   :  { %v1071_v4 = vadd.f32 %v1070_v3, %v999_v2  ;;  %v2417_v5 = vpop.f32.mrb[7].mxu1  ;;  %v2109_v2 = vld [vmem:[%s3372_s3 + $0x18] sm:$0xff] }
 0xf56   :  { %v2116_v5 = vld [vmem:[%s3381_s12 + $0x3] ss:$0 sm:$0xff] }
 0xf57   :  { %v1078_v6 = vmul.f32 %v2103_v33, %v1071_v4  ;;  %v1128_v33 = vld [vmem:[#allocation2 + $0x178] sm:$0xff] }
 0xf58   :  { %v2692_v34 = vpack.c.bf16 %v1128_v33, %v1127_v32 }
 0xf59   :  { %1079 = vadd.xlane.f32.xlu1 %v1078_v6  ;;  %v1082_v7 = vmul.f32 %v1078_v6, %v1078_v6 }
 0xf5a   :  { %2693 = vmatpush3.bf16.msra.mxu1 %v2692_v34 }
 0xf5b   :  { %1083 = vadd.xlane.f32.xlu0 %v1082_v7  ;;  %2724 = vmatprep.subr.bf16.mxu1 %v2840_v0 }
 0xf6a   :  { %1101 = vperm.xlu1 %2791, %v2108_v8  }
 0xf71   :  { %1095 = vperm.xlu0 %2792, %v2107_v9  }
 0xfe6   :  { %v1080_v35 = vpop.xlane.xlu1 %1079 }
 0xfe7   :  { %v1081_v36 = vmul.f32 0.03125, %v1080_v35 }
 0xfe8   :  { %v1084_v37 = vpop.xlane.xlu0 %1083 }
 0xfe9   :  { %v1086_v38 = vmul.f32 %v1081_v36, %v1081_v36  ;;  %v1085_v39 = vmul.f32 0.03125, %v1084_v37  ;;  %v1089_v43 = vsub.f32 %v1071_v4, %v1081_v36  ;;  %v2117_v36 = vld [vmem:[%s3376_s7 + $0x18] sm:$0xff] }
 0xfea   :  { %v1102_v48 = vpop.permute.xlu1 %1101 }
 0xfeb   :  { %v1087_v40 = vsub.f32 %v1085_v39, %v1086_v38 }
 0xfed   :  { %v1088_v41 = vmax.f32 %v1087_v40, 0.0 }
 0xfef   :  { %v1090_v42 = vadd.f32 1e-05, %v1088_v41 }
 0xff0   :  { %v1096_v46 = vpop.permute.xlu0 %1095 }
 0xff1   :  { %2803 = vrsqrt.f32 %v1090_v42 }
 0xffb   :  { %v2804_v44 = vpop.eup %2803 }
 0xffc   :  { %v1092_v45 = vmul.f32 %v2804_v44, %v1089_v43  ;;  %v2121_v43 = vld [vmem:[%s3379_s10 + $0x18] sm:$0xff] }
 0xffd   :  { %v2120_v44 = vld [vmem:[%s3378_s9 + $0x18] sm:$0xff] }
 0xffe   :  { %v1098_v47 = vmul.f32 %v1096_v46, %v1092_v45  ;;  %v1463_v45 = vld [vmem:[#allocation2 + $0x180] sm:$0xff]  ;;  %v1464_v46 = vld [vmem:[#allocation2 + $0x188] sm:$0xff] }
0x1000   :  { %v1104_v50 = vadd.f32 %v1102_v48, %v1098_v47  ;;  %v1465_v47 = vld [vmem:[#allocation2 + $0x190] sm:$0xff]  ;;  %v2701_v48 = vpack.c.bf16 %v1464_v46, %v1463_v45  ;;  %v2128_v45 = vld [vmem:[%s3375_s6 + $0x20] sm:$0xff] }
0x1001   :  { %v2127_v46 = vld [vmem:[%s3374_s5 + $0x20] sm:$0xff] }
0x1002   :  { %v1105_v15 = vadd.f32 %v1104_v50, %v3113_v21  ;;  %v1466_v50 = vld [vmem:[#allocation2 + $0x198] sm:$0xff] }
0x1004   :  { %vm1106_vm7 = vcmp.gt.f32.partialorder %v1105_v15, 0.0  ;;  %v1107_v51 = vmul.f32 0.01, %v1105_v15 }
0x1006   :  { %v1108_v52 = vsel %vm1106_vm7, %v1105_v15, %v1107_v51  ;;  %v2704_v15 = vpack.c.bf16 %v1466_v50, %v1465_v47  ;;  %v1467_v51 = vld [vmem:[#allocation2 + $0x1a0] sm:$0xff] }
0x1007   :  { %1109 = vrot.lane.b32.xlu1 %v1108_v52, %s2845_s28 }
0x1079   :  { %v1110_v53 = vpop.permute.xlu1 %1109 }
0x107a   :  { %v1111_v54 = vmax.f32 %v1108_v52, %v1110_v53  ;;  %v1468_v52 = vld [vmem:[#allocation2 + $0x1a8] sm:$0xff] }
0x107b   :  { %v2707_v53 = vpack.c.bf16 %v1468_v52, %v1467_v51 }
0x107c   :  { %2451 = vmatmul.mubr.f32.vlgmr.msra.gmra.mrb[8].mxu1 %v1111_v54  ;;  %v1469_v54 = vld [vmem:[#allocation2 + $0x1b0] sm:$0xff] }
0x107d   :  { %2512 = vmatprep.mubr.msk.f32.mxu1 %vm2841_vm0, %v2842_v1 }
0x114f   :  { %v3177_v55 = vpop.f32.mrb[8].mxu1 }
0x1150   :  { %1212 = vrot.lane.b32.xlu1 %v3177_v55, %s2845_s28  ;;  %1204 = vrot.lane.b32.xlu0 %v3177_v55, %s2844_s25  ;;  %v2452_v21 = vpop.f32.mrb[9].mxu1 }
0x1151   :  { %v1470_v21 = vld [vmem:[#allocation2 + $0x1b8] sm:$0xff] }
0x1154   :  { %1221 = vperm.xlu0 %2792, %v2110_v56   ;;  %v2710_v56 = vpack.c.bf16 %v1470_v21, %v1469_v54 }
0x11c2   :  { %v1205_v58 = vpop.permute.xlu0 %1204  ;;  %v1213_v62 = vpop.permute.xlu1 %1212 }
0x11c3   :  { %v1210_v59 = vmul.f32 %v2111_v57, %v1205_v58  ;;  %v1218_v63 = vmul.f32 %v2112_v61, %v1213_v62  ;;  %v1472_v58 = vld [vmem:[#allocation2 + $0x1c8] sm:$0xff] }
0x11c5   :  { %v2695_v60 = vpack.c.bf16 %v3177_v55, %v1210_v59 }
0x11c7   :  { %2696 = vmatpush3.bf16.msra.mxu0 %v2695_v60  ;;  %v1473_v60 = vld [vmem:[#allocation2 + $0x1d0] sm:$0xff] }
0x11c8   :  { %2457 = vmatprep.subr.mxu0 %v2842_v1 }
0x11cb   :  { %2458 = vmatpush3.msra.mxu0 %v1218_v63  ;;  %v1475_v63 = vld [vmem:[#allocation2 + $0x1e0] sm:$0xff] }
0x11cc   :  { %2460 = vmatmul.mubr.msk.f32.vlgmr.msra.gmra.mrb[10].mxu0 %vm94_vm1, %v2109_v2  ;;  %2697 = vmatprep.subr.bf16.mxu0 %v2840_v0  ;;  %v1476_v2 = vld [vmem:[#allocation2 + $0x1e8] sm:$0xff] }
0x11cd   :  { %2468 = vmatprep.mubr.msk.f32.mxu0 %vm2841_vm0, %v2842_v1 }
0x11d3   :  { %v1222_v3 = vpop.permute.xlu0 %1221 }
0x129f   :  { %v1293_v4 = vpop.f32.mrb[10].mxu0 }
0x12a0   :  { %v1294_v6 = vadd.f32 %v1293_v4, %v1222_v3  ;;  %v2461_v7 = vpop.f32.mrb[11].mxu0  ;;  %v2719_v3 = vpack.c.bf16 %v1476_v2, %v1475_v63  ;;  %v1477_v4 = vld [vmem:[#allocation2 + $0x1f0] sm:$0xff]  ;;  %v2131_v2 = vld [vmem:[%s3377_s8 + $0x20] sm:$0xff] }
0x12a2   :  { %v1306_v8 = vmul.f32 %v2116_v5, %v1294_v6 }
0x12a4   :  { %1307 = vadd.xlane.f32.xlu1 %v1306_v8  ;;  %v1310_v9 = vmul.f32 %v1306_v8, %v1306_v8 }
0x12a6   :  { %1311 = vadd.xlane.f32.xlu0 %v1310_v9 }
0x12b5   :  { %1329 = vperm.xlu1 %2791, %v2115_v10  }
0x12bc   :  { %1323 = vperm.xlu0 %2792, %v2114_v11  }
0x1331   :  { %v1308_v12 = vpop.xlane.xlu1 %1307 }
0x1332   :  { %v1309_v13 = vmul.f32 0.0625, %v1308_v12 }
0x1333   :  { %v1312_v14 = vpop.xlane.xlu0 %1311 }
0x1334   :  { %v1314_v16 = vmul.f32 %v1309_v13, %v1309_v13  ;;  %v1313_v17 = vmul.f32 0.0625, %v1312_v14  ;;  %v1317_v49 = vsub.f32 %v1294_v6, %v1309_v13 }
0x1335   :  { %v1330_v26 = vpop.permute.xlu1 %1329 }
0x1336   :  { %v1315_v18 = vsub.f32 %v1313_v17, %v1314_v16 }
0x1338   :  { %v1316_v19 = vmax.f32 %v1315_v18, 0.0 }
0x133a   :  { %v1318_v20 = vadd.f32 1e-05, %v1316_v19 }
0x133b   :  { %v1324_v24 = vpop.permute.xlu0 %1323 }
0x133c   :  { %2805 = vrsqrt.f32 %v1318_v20 }
0x1346   :  { %v2806_v22 = vpop.eup %2805 }
0x1347   :  { %v1320_v23 = vmul.f32 %v2806_v22, %v1317_v49 }
0x1349   :  { %v1326_v25 = vmul.f32 %v1324_v24, %v1320_v23 }
0x134b   :  { %v1332_v27 = vadd.f32 %v1330_v26, %v1326_v25 }
0x134d   :  { %vm1333_vm8 = vcmp.gt.f32.partialorder %v1332_v27, 0.0  ;;  %v1334_v28 = vmul.f32 0.01, %v1332_v27 }
0x134f   :  { %v1335_v29 = vsel %vm1333_vm8, %v1332_v27, %v1334_v28 }
0x1350   :  { %1343 = vrot.lane.b32.xlu0 %v1335_v29, %s2845_s28  ;;  %1340 = vrot.lane.b32.xlu1 %v1335_v29, %s2844_s25 }
0x1354   :  { %1348 = vperm.xlu1 %2791, %v2118_v30   ;;  %v2124_v30 = vld [vmem:[%s3380_s11 + $0xc] ss:$0 sm:$0xff] }
0x13c2   :  { %v1341_v31 = vpop.permute.xlu1 %1340  ;;  %v1344_v34 = vpop.permute.xlu0 %1343 }
0x13c3   :  { %v1342_v32 = vmul.f32 %v2111_v57, %v1341_v31  ;;  %v1345_v35 = vmul.f32 %v2112_v61, %v1344_v34  ;;  %v1471_v57 = vld [vmem:[#allocation2 + $0x1c0] sm:$0xff]  ;;  %v1474_v61 = vld [vmem:[#allocation2 + $0x1d8] sm:$0xff]  ;;  %v2125_v34 = vld [vmem:[%s3380_s11 + $0xe] ss:$0 sm:$0xff] }
0x13c4   :  { %v2713_v59 = vpack.c.bf16 %v1472_v58, %v1471_v57  ;;  %v2716_v62 = vpack.c.bf16 %v1474_v61, %v1473_v60 }
0x13c5   :  { %v2698_v33 = vpack.c.bf16 %v1335_v29, %v1342_v32  ;;  %v2123_v29 = vld [vmem:[%s3373_s4 + $0x20] sm:$0xff] }
0x13c7   :  { %2699 = vmatpush3.bf16.msra.mxu0 %v2698_v33 }
0x13c8   :  { %2466 = vmatprep.subr.mxu0 %v2842_v1 }
0x13cb   :  { %2467 = vmatpush3.msra.mxu0 %v1345_v35 }
0x13cc   :  { %2469 = vmatmul.mubr.msk.f32.vlgmr.msra.gmra.mrb[12].mxu0 %vm94_vm1, %v2117_v36  ;;  %2700 = vmatprep.subr.bf16.mxu0 %v2840_v0 }
0x13cd   :  { %2503 = vmatprep.mubr.msk.f32.mxu0 %vm2841_vm0, %v2842_v1  ;;  %2702 = vmatpush3.bf16.msra.mxu0 %v2701_v48 }
0x13ce   :  { %2703 = vmatprep.subr.bf16.mxu0 %v2840_v0 }
0x13d1   :  { %2705 = vmatpush3.bf16.msra.mxu0 %v2704_v15 }
0x13d2   :  { %2706 = vmatprep.subr.bf16.mxu0 %v2840_v0 }
0x13d3   :  { %v1349_v37 = vpop.permute.xlu1 %1348 }
0x13d5   :  { %2708 = vmatpush3.bf16.msra.mxu0 %v2707_v53 }
0x13d6   :  { %2709 = vmatprep.subr.bf16.mxu0 %v2840_v0 }
0x13d9   :  { %2711 = vmatpush3.bf16.msra.mxu0 %v2710_v56 }
0x13da   :  { %2712 = vmatprep.subr.bf16.mxu0 %v2840_v0 }
0x13dd   :  { %2714 = vmatpush3.bf16.msra.mxu0 %v2713_v59 }
0x13de   :  { %2715 = vmatprep.subr.bf16.mxu0 %v2840_v0 }
0x13e1   :  { %2717 = vmatpush3.bf16.msra.mxu0 %v2716_v62 }
0x13e2   :  { %2718 = vmatprep.subr.bf16.mxu0 %v2840_v0 }
0x13e5   :  { %2720 = vmatpush3.bf16.msra.mxu0 %v2719_v3 }
0x13e6   :  { %2721 = vmatprep.subr.bf16.mxu0 %v2840_v0 }
0x149f   :  { %v1420_v38 = vpop.f32.mrb[12].mxu0 }
0x14a0   :  { %v1421_v39 = vadd.f32 %v1420_v38, %v1349_v37  ;;  %v2470_v40 = vpop.f32.mrb[13].mxu0  ;;  %v2122_v37 = vld [vmem:[%s3372_s3 + $0x20] sm:$0xff] }
0x14a1   :  { %v2129_v40 = vld [vmem:[%s3381_s12 + $0x4] ss:$0 sm:$0xff] }
0x14a2   :  { %v1428_v41 = vmul.f32 %v2116_v5, %v1421_v39  ;;  %v1478_v5 = vld [vmem:[#allocation2 + $0x1f8] sm:$0xff] }
0x14a3   :  { %v2722_v6 = vpack.c.bf16 %v1478_v5, %v1477_v4 }
0x14a4   :  { %1429 = vadd.xlane.f32.xlu0 %v1428_v41  ;;  %v1432_v42 = vmul.f32 %v1428_v41, %v1428_v41 }
0x14a5   :  { %2723 = vmatpush3.bf16.msra.mxu0 %v2722_v6 }
0x14a6   :  { %1433 = vadd.xlane.f32.xlu1 %v1432_v42  ;;  %2754 = vmatprep.subr.bf16.mxu0 %v2840_v0 }
0x14b7   :  { %1451 = vperm.xlu1 %2791, %v2121_v43  }
0x14ba   :  { %1445 = vperm.xlu0 %2792, %v2120_v44  }
0x1531   :  { %v1430_v7 = vpop.xlane.xlu0 %1429 }
0x1532   :  { %v1431_v8 = vmul.f32 0.0625, %v1430_v7 }
0x1533   :  { %v1434_v9 = vpop.xlane.xlu1 %1433 }
0x1534   :  { %v1436_v10 = vmul.f32 %v1431_v8, %v1431_v8  ;;  %v1435_v11 = vmul.f32 0.0625, %v1434_v9  ;;  %v1439_v16 = vsub.f32 %v1421_v39, %v1431_v8  ;;  %v2130_v8 = vld [vmem:[%s3376_s7 + $0x20] sm:$0xff] }
0x1536   :  { %v1437_v12 = vsub.f32 %v1435_v11, %v1436_v10 }
0x1537   :  { %v1452_v49 = vpop.permute.xlu1 %1451 }
0x1538   :  { %v1438_v13 = vmax.f32 %v1437_v12, 0.0 }
0x1539   :  { %v1446_v19 = vpop.permute.xlu0 %1445 }
0x153a   :  { %v1440_v14 = vadd.f32 1e-05, %v1438_v13 }
0x153c   :  { %2807 = vrsqrt.f32 %v1440_v14 }
0x1546   :  { %v2808_v17 = vpop.eup %2807 }
0x1547   :  { %v1442_v18 = vmul.f32 %v2808_v17, %v1439_v16  ;;  %v2134_v16 = vld [vmem:[%s3379_s10 + $0x20] sm:$0xff] }
0x1548   :  { %v2133_v17 = vld [vmem:[%s3378_s9 + $0x20] sm:$0xff] }
0x1549   :  { %v1448_v20 = vmul.f32 %v1446_v19, %v1442_v18  ;;  %v1813_v18 = vld [vmem:[#allocation2 + $0x200] sm:$0xff]  ;;  %v1814_v19 = vld [vmem:[#allocation2 + $0x208] sm:$0xff] }
0x154b   :  { %v1454_v22 = vadd.f32 %v1452_v49, %v1448_v20  ;;  %v1815_v20 = vld [vmem:[#allocation2 + $0x210] sm:$0xff]  ;;  %v2731_v49 = vpack.c.bf16 %v1814_v19, %v1813_v18  ;;  %v1912_v18 = vld [vmem:[%s3383_s14 + $0x68] sm:$0xff] }
0x154d   :  { %v1455_v23 = vadd.f32 %v1454_v22, %v3177_v55  ;;  %v1816_v22 = vld [vmem:[#allocation2 + $0x218] sm:$0xff] }
0x154f   :  { %vm1456_vm9 = vcmp.gt.f32.partialorder %v1455_v23, 0.0  ;;  %v1457_v24 = vmul.f32 0.01, %v1455_v23 }
0x1551   :  { %v1458_v25 = vsel %vm1456_vm9, %v1455_v23, %v1457_v24  ;;  %v2734_v23 = vpack.c.bf16 %v1816_v22, %v1815_v20  ;;  %v1817_v24 = vld [vmem:[#allocation2 + $0x220] sm:$0xff]  ;;  %v1913_v20 = vld [vmem:[%s3383_s14 + $0x70] sm:$0xff] }
0x1552   :  { %1459 = vrot.lane.b32.xlu0 %v1458_v25, %s2845_s28 }
0x15c4   :  { %v1460_v26 = vpop.permute.xlu0 %1459 }
0x15c5   :  { %v1461_v27 = vmax.f32 %v1458_v25, %v1460_v26  ;;  %v1818_v25 = vld [vmem:[#allocation2 + $0x228] sm:$0xff] }
0x15c6   :  { %v2737_v26 = vpack.c.bf16 %v1818_v25, %v1817_v24 }
0x15c7   :  { %2504 = vmatmul.mubr.f32.vlgmr.msra.gmra.mrb[14].mxu0 %v1461_v27  ;;  %v1819_v27 = vld [vmem:[#allocation2 + $0x230] sm:$0xff] }
0x15c8   :  { %2591 = vmatprep.mubr.msk.f32.mxu0 %vm2841_vm0, %v2842_v1 }
0x169a   :  { %v3241_v28 = vpop.f32.mrb[14].mxu0 }
0x169b   :  { %1562 = vrot.lane.b32.xlu0 %v3241_v28, %s2845_s28  ;;  %1554 = vrot.lane.b32.xlu1 %v3241_v28, %s2844_s25  ;;  %v2505_v55 = vpop.f32.mrb[15].mxu0 }
0x169c   :  { %v1820_v55 = vld [vmem:[#allocation2 + $0x238] sm:$0xff] }
0x169f   :  { %1571 = vperm.xlu1 %2791, %v2123_v29   ;;  %v2740_v29 = vpack.c.bf16 %v1820_v55, %v1819_v27 }
0x170d   :  { %v1555_v31 = vpop.permute.xlu1 %1554  ;;  %v1563_v35 = vpop.permute.xlu0 %1562 }
0x170e   :  { %v1560_v32 = vmul.f32 %v2124_v30, %v1555_v31  ;;  %v1568_v36 = vmul.f32 %v2125_v34, %v1563_v35  ;;  %v1822_v31 = vld [vmem:[#allocation2 + $0x248] sm:$0xff] }
0x1710   :  { %v2725_v33 = vpack.c.bf16 %v3241_v28, %v1560_v32 }
0x1712   :  { %2726 = vmatpush3.bf16.msra.mxu1 %v2725_v33  ;;  %v1823_v33 = vld [vmem:[#allocation2 + $0x250] sm:$0xff] }
0x1713   :  { %2510 = vmatprep.subr.mxu1 %v2842_v1 }
0x1716   :  { %2511 = vmatpush3.msra.mxu1 %v1568_v36  ;;  %v1825_v36 = vld [vmem:[#allocation2 + $0x260] sm:$0xff] }
0x1717   :  { %2513 = vmatmul.mubr.msk.f32.vlgmr.msra.gmra.mrb[10].mxu1 %vm94_vm1, %v2122_v37  ;;  %2727 = vmatprep.subr.bf16.mxu1 %v2840_v0  ;;  %v1826_v37 = vld [vmem:[#allocation2 + $0x268] sm:$0xff] }
0x1718   :  { %2521 = vmatprep.mubr.msk.f32.mxu1 %vm2841_vm0, %v2842_v1 }
0x171e   :  { %v1572_v38 = vpop.permute.xlu1 %1571 }
0x17ea   :  { %v1643_v39 = vpop.f32.mrb[10].mxu1 }
0x17eb   :  { %v1644_v41 = vadd.f32 %v1643_v39, %v1572_v38  ;;  %v2514_v42 = vpop.f32.mrb[11].mxu1  ;;  %v2749_v38 = vpack.c.bf16 %v1826_v37, %v1825_v36  ;;  %v1827_v39 = vld [vmem:[#allocation2 + $0x270] sm:$0xff] }
0x17ed   :  { %v1656_v43 = vmul.f32 %v2129_v40, %v1644_v41 }
0x17ef   :  { %1657 = vadd.xlane.f32.xlu0 %v1656_v43  ;;  %v1660_v44 = vmul.f32 %v1656_v43, %v1656_v43 }
0x17f1   :  { %1661 = vadd.xlane.f32.xlu1 %v1660_v44 }
0x1802   :  { %1679 = vperm.xlu1 %2791, %v2128_v45  }
0x1805   :  { %1673 = vperm.xlu0 %2792, %v2127_v46  }
0x187c   :  { %v1658_v47 = vpop.xlane.xlu0 %1657 }
0x187d   :  { %v1659_v48 = vmul.f32 0.125, %v1658_v47 }
0x187e   :  { %v1662_v50 = vpop.xlane.xlu1 %1661 }
0x187f   :  { %v1664_v15 = vmul.f32 %v1659_v48, %v1659_v48  ;;  %v1663_v51 = vmul.f32 0.125, %v1662_v50  ;;  %v1667_v21 = vsub.f32 %v1644_v41, %v1659_v48 }
0x1881   :  { %v1665_v52 = vsub.f32 %v1663_v51, %v1664_v15 }
0x1882   :  { %v1680_v60 = vpop.permute.xlu1 %1679 }
0x1883   :  { %v1666_v53 = vmax.f32 %v1665_v52, 0.0 }
0x1884   :  { %v1674_v58 = vpop.permute.xlu0 %1673 }
0x1885   :  { %v1668_v54 = vadd.f32 1e-05, %v1666_v53 }
0x1887   :  { %2809 = vrsqrt.f32 %v1668_v54 }
0x1891   :  { %v2810_v56 = vpop.eup %2809 }
0x1892   :  { %v1670_v57 = vmul.f32 %v2810_v56, %v1667_v21 }
0x1894   :  { %v1676_v59 = vmul.f32 %v1674_v58, %v1670_v57 }
0x1896   :  { %v1682_v61 = vadd.f32 %v1680_v60, %v1676_v59  ;;  %v1990_v60 = vld [vmem:[%s3385_s16] sm:$0xff] }
0x1898   :  { %vm1683_vm10 = vcmp.gt.f32.partialorder %v1682_v61, 0.0  ;;  %v1684_v62 = vmul.f32 0.01, %v1682_v61 }
0x189a   :  { %v1685_v63 = vsel %vm1683_vm10, %v1682_v61, %v1684_v62  ;;  %v1899_v61 = vld [vmem:[%s3383_s14] sm:$0xff]  ;;  %v1900_v62 = vld [vmem:[%s3383_s14 + $0x8] sm:$0xff] }
0x189b   :  { %1693 = vrot.lane.b32.xlu1 %v1685_v63, %s2845_s28  ;;  %1690 = vrot.lane.b32.xlu0 %v1685_v63, %s2844_s25 }
0x189f   :  { %1698 = vperm.xlu0 %2792, %v2131_v2   ;;  %v1902_v2 = vld [vmem:[%s3383_s14 + $0x18] sm:$0xff] }
0x190d   :  { %v1691_v3 = vpop.permute.xlu0 %1690  ;;  %v1694_v6 = vpop.permute.xlu1 %1693 }
0x190e   :  { %v1692_v4 = vmul.f32 %v2124_v30, %v1691_v3  ;;  %v1695_v7 = vmul.f32 %v2125_v34, %v1694_v6  ;;  %v1821_v30 = vld [vmem:[#allocation2 + $0x240] sm:$0xff]  ;;  %v1824_v34 = vld [vmem:[#allocation2 + $0x258] sm:$0xff] }
0x190f   :  { %v2743_v32 = vpack.c.bf16 %v1822_v31, %v1821_v30  ;;  %v2746_v35 = vpack.c.bf16 %v1824_v34, %v1823_v33 }
0x1910   :  { %v2728_v5 = vpack.c.bf16 %v1685_v63, %v1692_v4  ;;  %v2755_v63 = vpack.c.bf16 %v1900_v62, %v1899_v61  ;;  %v1903_v4 = vld [vmem:[%s3383_s14 + $0x20] sm:$0xff] }
0x1912   :  { %2729 = vmatpush3.bf16.msra.mxu1 %v2728_v5  ;;  %2756 = vmatpush3.bf16.msra.mxu0 %v2755_v63  ;;  %v1904_v5 = vld [vmem:[%s3383_s14 + $0x28] sm:$0xff] }
0x1913   :  { %2519 = vmatprep.subr.mxu1 %v2842_v1  ;;  %2757 = vmatprep.subr.bf16.mxu0 %v2840_v0  ;;  %v2761_v6 = vpack.c.bf16 %v1904_v5, %v1903_v4 }
0x1916   :  { %2520 = vmatpush3.msra.mxu1 %v1695_v7  ;;  %v1905_v7 = vld [vmem:[%s3383_s14 + $0x30] sm:$0xff] }
0x1917   :  { %2522 = vmatmul.mubr.msk.f32.vlgmr.msra.gmra.mrb[12].mxu1 %vm94_vm1, %v2130_v8  ;;  %2730 = vmatprep.subr.bf16.mxu1 %v2840_v0  ;;  %v1906_v8 = vld [vmem:[%s3383_s14 + $0x38] sm:$0xff] }
0x1918   :  { %2556 = vmatprep.mubr.msk.f32.mxu1 %vm2841_vm0, %v2842_v1  ;;  %2732 = vmatpush3.bf16.msra.mxu1 %v2731_v49  ;;  %v1914_v49 = vld [vmem:[%s3383_s14 + $0x78] sm:$0xff] }
0x1919   :  { %2733 = vmatprep.subr.bf16.mxu1 %v2840_v0  ;;  %v2776_v22 = vpack.c.bf16 %v1914_v49, %v1913_v20 }
0x191c   :  { %2735 = vmatpush3.bf16.msra.mxu1 %v2734_v23 }
0x191d   :  { %2736 = vmatprep.subr.bf16.mxu1 %v2840_v0 }
0x191e   :  { %v1699_v9 = vpop.permute.xlu0 %1698 }
0x1920   :  { %2738 = vmatpush3.bf16.msra.mxu1 %v2737_v26 }
0x1921   :  { %2739 = vmatprep.subr.bf16.mxu1 %v2840_v0 }
0x1924   :  { %2741 = vmatpush3.bf16.msra.mxu1 %v2740_v29 }
0x1925   :  { %2742 = vmatprep.subr.bf16.mxu1 %v2840_v0 }
0x1928   :  { %2744 = vmatpush3.bf16.msra.mxu1 %v2743_v32 }
0x1929   :  { %2745 = vmatprep.subr.bf16.mxu1 %v2840_v0 }
0x192c   :  { %2747 = vmatpush3.bf16.msra.mxu1 %v2746_v35 }
0x192d   :  { %2748 = vmatprep.subr.bf16.mxu1 %v2840_v0 }
0x1930   :  { %2750 = vmatpush3.bf16.msra.mxu1 %v2749_v38 }
0x1931   :  { %2751 = vmatprep.subr.bf16.mxu1 %v2840_v0 }
0x19ea   :  { %v1770_v10 = vpop.f32.mrb[12].mxu1 }
0x19eb   :  { %v1771_v11 = vadd.f32 %v1770_v10, %v1699_v9  ;;  %v2523_v12 = vpop.f32.mrb[13].mxu1  ;;  %v2764_v9 = vpack.c.bf16 %v1906_v8, %v1905_v7  ;;  %v1907_v10 = vld [vmem:[%s3383_s14 + $0x40] sm:$0xff] }
0x19ed   :  { %v1778_v13 = vmul.f32 %v2129_v40, %v1771_v11  ;;  %v1828_v40 = vld [vmem:[#allocation2 + $0x278] sm:$0xff] }
0x19ee   :  { %v2752_v41 = vpack.c.bf16 %v1828_v40, %v1827_v39 }
0x19ef   :  { %1779 = vadd.xlane.f32.xlu1 %v1778_v13  ;;  %v1782_v14 = vmul.f32 %v1778_v13, %v1778_v13  ;;  %v1909_v13 = vld [vmem:[%s3383_s14 + $0x50] sm:$0xff] }
0x19f0   :  { %2753 = vmatpush3.bf16.msra.mxu1 %v2752_v41 }
0x19f1   :  { %1783 = vadd.xlane.f32.xlu0 %v1782_v14  ;;  %2778 = vmatprep.subr.bf16.mxu1 %v2840_v0  ;;  %v1910_v14 = vld [vmem:[%s3383_s14 + $0x58] sm:$0xff] }
0x1a00   :  { %1801 = vperm.xlu1 %2791, %v2134_v16   ;;  %v2770_v16 = vpack.c.bf16 %v1910_v14, %v1909_v13 }
0x1a07   :  { %1795 = vperm.xlu0 %2792, %v2133_v17   ;;  %v1911_v17 = vld [vmem:[%s3383_s14 + $0x60] sm:$0xff] }
0x1a08   :  { %v2773_v19 = vpack.c.bf16 %v1912_v18, %v1911_v17 }
0x1a7c   :  { %v1780_v42 = vpop.xlane.xlu1 %1779 }
0x1a7d   :  { %v1781_v43 = vmul.f32 0.125, %v1780_v42 }
0x1a7e   :  { %v1784_v44 = vpop.xlane.xlu0 %1783 }
0x1a7f   :  { %v1786_v45 = vmul.f32 %v1781_v43, %v1781_v43  ;;  %v1785_v46 = vmul.f32 0.125, %v1784_v44  ;;  %v1789_v15 = vsub.f32 %v1771_v11, %v1781_v43  ;;  %v1908_v11 = vld [vmem:[%s3383_s14 + $0x48] sm:$0xff] }
0x1a80   :  { %v1802_v21 = vpop.permute.xlu1 %1801  ;;  %v2767_v12 = vpack.c.bf16 %v1908_v11, %v1907_v10 }
0x1a81   :  { %v1787_v47 = vsub.f32 %v1785_v46, %v1786_v45 }
0x1a83   :  { %v1788_v48 = vmax.f32 %v1787_v47, 0.0 }
0x1a85   :  { %v1790_v50 = vadd.f32 1e-05, %v1788_v48 }
0x1a86   :  { %v1796_v53 = vpop.permute.xlu0 %1795 }
0x1a87   :  { %2811 = vrsqrt.f32 %v1790_v50 }
0x1a91   :  { %v2812_v51 = vpop.eup %2811 }
0x1a92   :  { %v1792_v52 = vmul.f32 %v2812_v51, %v1789_v15 }
0x1a94   :  { %v1798_v54 = vmul.f32 %v1796_v53, %v1792_v52 }
0x1a96   :  { %v1804_v56 = vadd.f32 %v1802_v21, %v1798_v54 }
0x1a98   :  { %v1805_v57 = vadd.f32 %v1804_v56, %v3241_v28  ;;  %v1901_v28 = vld [vmem:[%s3383_s14 + $0x10] sm:$0xff] }
0x1a99   :  { %v2758_v3 = vpack.c.bf16 %v1902_v2, %v1901_v28 }
0x1a9a   :  { %vm1806_vm11 = vcmp.gt.f32.partialorder %v1805_v57, 0.0  ;;  %v1807_v58 = vmul.f32 0.01, %v1805_v57 }
0x1a9b   :  { %2759 = vmatpush3.bf16.msra.mxu0 %v2758_v3 }
0x1a9c   :  { %v1808_v59 = vsel %vm1806_vm11, %v1805_v57, %v1807_v58  ;;  %2760 = vmatprep.subr.bf16.mxu0 %v2840_v0 }
0x1a9d   :  { %1809 = vrot.lane.b32.xlu1 %v1808_v59, %s2845_s28 }
0x1a9f   :  { %2762 = vmatpush3.bf16.msra.mxu0 %v2761_v6 }
0x1aa0   :  { %2763 = vmatprep.subr.bf16.mxu0 %v2840_v0 }
0x1aa1   :  { %1993 = vperm.xlu1 %2791, %v1990_v60  }
0x1aa3   :  { %2765 = vmatpush3.bf16.msra.mxu0 %v2764_v9 }
0x1aa4   :  { %2766 = vmatprep.subr.bf16.mxu0 %v2840_v0 }
0x1aa7   :  { %2768 = vmatpush3.bf16.msra.mxu0 %v2767_v12 }
0x1aa8   :  { %2769 = vmatprep.subr.bf16.mxu0 %v2840_v0 }
0x1aab   :  { %2771 = vmatpush3.bf16.msra.mxu0 %v2770_v16 }
0x1aac   :  { %2772 = vmatprep.subr.bf16.mxu0 %v2840_v0 }
0x1aaf   :  { %2774 = vmatpush3.bf16.msra.mxu0 %v2773_v19 }
0x1ab0   :  { %2775 = vmatprep.subr.bf16.mxu0 %v2840_v0  ;;  %v1989_v0 = vld [vmem:[%s3384_s15] sm:$0xff] }
0x1ab3   :  { %2777 = vmatpush3.bf16.msra.mxu0 %v2776_v22 }
0x1b0f   :  { %v1810_v23 = vpop.permute.xlu1 %1809 }
0x1b10   :  { %v1811_v24 = vmax.f32 %v1808_v59, %v1810_v23 }
0x1b12   :  { %2557 = vmatmul.mubr.f32.vlgmr.msra.gmra.mrb[14].mxu1 %v1811_v24 }
0x1b13   :  { %2598 = vmatprep.mubr.msk.f32.mxu1 %vm2841_vm0, %v2842_v1 }
0x1b20   :  { %v1994_v31 = vpop.permute.xlu1 %1993 }
0x1be5   :  { %v1895_v25 = vpop.f32.mrb[14].mxu1 }
0x1be6   :  { %v2558_v26 = vpop.f32.mrb[15].mxu1  ;;  %2592 = vmatmul.mubr.f32.vlgmr.msra.gmra.mrb[16].mxu0 %v1895_v25 }
0x1cb9   :  { %v1981_v27 = vpop.f32.mrb[16].mxu0 }
0x1cba   :  { %1986 = vrot.lane.b32.xlu0 %v1981_v27, %s2846_s18  ;;  %v2593_v55 = vpop.f32.mrb[17].mxu0 }
0x1d2c   :  { %v1987_v29 = vpop.permute.xlu0 %1986 }
0x1d2d   :  { %v2779_v30 = vpack.c.bf16 %v1987_v29, %v1981_v27 }
0x1d2f   :  { %2780 = vmatpush3.bf16.msra.mxu1 %v2779_v30 }
0x1d32   :  { %2599 = vmatmul.mubr.msk.f32.vlgmr.msra.gmra.mrb[16].mxu1 %vm1996_vm12, %v1989_v0 }
0x1e05   :  { %v2066_v32 = vpop.f32.mrb[16].mxu1 }
0x1e06   :  { %v2067_v1 = vadd.f32 %v2066_v32, %v1994_v31  ;;  %v2600_v33 = vpop.f32.mrb[17].mxu1 }
0x1e08   :  { %2071 = vst.msk [vmem:[%s3386_s17] sm:$0xff] %vm2070_vm13, %v2067_v1 }
0x1e09   :  { %2076 = vsyncpa [#allocation3], 1 }

</bundles_post_ra>
